<compile_context>
chip_gen: v7x
topology: tpu7x:2x2x1
jax: 0.10.0
libtpu: 0.0.40
codegen_flags: <defaults>
</compile_context>

<pallas_src>
import functools

import jax
import jax.numpy as jnp
from jax import lax
from jax.experimental import pallas as pl
from jax.experimental.pallas import tpu as pltpu

_LN_EPS = 1e-5


# ----------------------------- shared math helpers ---------------------------
def _layer_norm(x, w, b):
    mu = jnp.mean(x, axis=-1, keepdims=True)
    xc = x - mu
    var = jnp.mean(xc * xc, axis=-1, keepdims=True)
    return xc * lax.rsqrt(var + _LN_EPS) * w + b


def _sigmoid(x):
    return 1.0 / (1.0 + jnp.exp(-x))


def _softmax_over_slots(logits):
    # softmax over axis 0 (the slot axis), matching F.softmax(logits, dim=0).
    m = jnp.max(logits, axis=0, keepdims=True)
    e = jnp.exp(logits - m)
    return e / jnp.sum(e, axis=0, keepdims=True)


def _mm(a, b):
    return jnp.dot(a, b, preferred_element_type=jnp.float32)


def _mm_nt(a, b):
    # a @ b.T (contract last dims of both), f32 accumulation on the MXU;
    # avoids materializing an explicit transpose of k.
    return lax.dot_general(a, b, (((1,), (1,)), ((), ())),
                           preferred_element_type=jnp.float32)


# ----------------------------- Pallas kernel ---------------------------------
def _slot_attention_kernel(
        feat_ref, slots_ref,
        lnf_w_ref, lnf_b_ref, lns_w_ref, lns_b_ref, lnm_w_ref, lnm_b_ref,
        wq_ref, wk_ref, wv_ref,
        w_ih_ref, w_hh_ref, b_ih_ref, b_hh_ref,
        mlp_w1_ref, mlp_b1_ref, mlp_w2_ref, mlp_b2_ref,
        slots_out_ref, attn_out_ref,
        *, num_iter, epsilon, scale):
    D = slots_ref.shape[-1]

    # features: LayerNorm + k/v projections (shared by all iterations)
    f = _layer_norm(feat_ref[...], lnf_w_ref[...], lnf_b_ref[...])   # (N, F)
    k = _mm(f, wk_ref[...])                                          # (N, D)
    v = _mm(f, wv_ref[...])                                          # (N, D)

    lns_w, lns_b = lns_w_ref[...], lns_b_ref[...]
    wq = wq_ref[...]

    def attn_logits(s):
        q = _mm(_layer_norm(s, lns_w, lns_b), wq)                    # (K, D)
        return _mm_nt(q, k) * scale                                  # (K, N)

    slots = slots_ref[...]                                           # (K, D)

    # (num_iter - 1) refinement iterations, statically unrolled (num_iter=2 -> 1)
    for _ in range(num_iter - 1):
        slots_prev = slots
        attn = _softmax_over_slots(attn_logits(slots))               # (K, N)
        attn_wm = attn / (jnp.sum(attn, axis=-1, keepdims=True) + epsilon)
        updates = _mm(attn_wm, v)                                    # (K, D)

        # GRUCell(updates, slots_prev); gate order [r, z, n] as in PyTorch.
        gi = _mm(updates, w_ih_ref[...]) + b_ih_ref[...]             # (K, 3D)
        gh = _mm(slots_prev, w_hh_ref[...]) + b_hh_ref[...]          # (K, 3D)
        r = _sigmoid(gi[:, 0:D] + gh[:, 0:D])
        z = _sigmoid(gi[:, D:2 * D] + gh[:, D:2 * D])
        n = jnp.tanh(gi[:, 2 * D:3 * D] + r * gh[:, 2 * D:3 * D])
        slots = (1.0 - z) * n + z * slots_prev

        # residual MLP: Linear -> ReLU -> Linear
        h = _layer_norm(slots, lnm_w_ref[...], lnm_b_ref[...])
        h = jnp.maximum(_mm(h, mlp_w1_ref[...]) + mlp_b1_ref[...], 0.0)
        slots = slots + _mm(h, mlp_w2_ref[...]) + mlp_b2_ref[...]
        # `slots.detach() + slots_init - slots_init.detach()` is a straight-
        # through trick: identity in the forward pass, nothing to compute.

    # final attention map (get_attn) on the refined slots
    attn_final = _softmax_over_slots(attn_logits(slots))             # (K, N)

    slots_out_ref[...] = slots.astype(slots_out_ref.dtype)
    attn_out_ref[...] = attn_final.astype(attn_out_ref.dtype)


# ------------------------------ wrapper ---------------------------------------
_PARAM_ORDER = ("slots_init",
                "ln_feat_w", "ln_feat_b", "ln_slots_w", "ln_slots_b",
                "ln_mlp_w", "ln_mlp_b",
                "wq", "wk", "wv",
                "w_ih", "w_hh", "b_ih", "b_hh",
                "mlp_w1", "mlp_b1", "mlp_w2", "mlp_b2")


def slot_attention_forward(features, params, *, slots=None, num_iter=2,
                           epsilon=1.0):
    """features: (N, feature_size).  Returns (slots (K, D), attn (N, K))."""
    N, _ = features.shape
    init_slots = params["slots_init"] if slots is None else slots
    K, D = init_slots.shape
    scale = float(D) ** -0.5

    args = [features, init_slots] + [params[name] for name in _PARAM_ORDER[1:]]
    # Single grid step: every operand is one full-array VMEM block, so there is
    # no pipeline prologue / per-step (~0.35 µs) overhead for this small regime.
    in_specs = [pl.BlockSpec(a.shape, lambda i: (0, 0)) for a in args]

    kernel = functools.partial(_slot_attention_kernel, num_iter=num_iter,
                               epsilon=epsilon, scale=scale)

    slots_out, attn_kn = pl.pallas_call(
        kernel,
        out_shape=(jax.ShapeDtypeStruct((K, D), features.dtype),
                   jax.ShapeDtypeStruct((K, N), features.dtype)),
        grid=(1,),
        in_specs=in_specs,
        out_specs=(pl.BlockSpec((K, D), lambda i: (0, 0)),
                   pl.BlockSpec((K, N), lambda i: (0, 0))),
        compiler_params=pltpu.CompilerParams(
            dimension_semantics=("arbitrary",)),
    )(*args)
    # Kernel emits attention as (K, N) (lane-dense tokens); get_attn's (N, K)
    # layout is produced by a cheap wrapper-side transpose.
    return slots_out, attn_kn.T


# -------------------------- parameter init ------------------------------------
def init_slot_attention_params(key, feature_size, slot_size, num_slots,
                               mlp_ratio=2):
    """Weights stored as (fan_in, fan_out) — transposed from PyTorch Linear."""
    F, D, H = feature_size, slot_size, slot_size * mlp_ratio
    ks = jax.random.split(key, 8)

    def xavier(k, fan_in, fan_out):
        bound = (6.0 / (fan_in + fan_out)) ** 0.5
        return jax.random.uniform(k, (fan_in, fan_out), jnp.float32,
                                  -bound, bound)

    def kaiming(k, fan_in, fan_out):   # kaiming_uniform_, relu gain
        bound = (2.0 ** 0.5) * (3.0 / fan_in) ** 0.5
        return jax.random.uniform(k, (fan_in, fan_out), jnp.float32,
                                  -bound, bound)

    return {
        "slots_init": 0.02 * jax.random.normal(ks[0], (num_slots, D),
                                               jnp.float32),
        "ln_feat_w": jnp.ones((1, F), jnp.float32),
        "ln_feat_b": jnp.zeros((1, F), jnp.float32),
        "ln_slots_w": jnp.ones((1, D), jnp.float32),
        "ln_slots_b": jnp.zeros((1, D), jnp.float32),
        "ln_mlp_w": jnp.ones((1, D), jnp.float32),
        "ln_mlp_b": jnp.zeros((1, D), jnp.float32),
        "wq": xavier(ks[1], D, D),
        "wk": xavier(ks[2], F, D),
        "wv": xavier(ks[3], F, D),
        # GRUCell weights as (fan_in, 3*hidden), gate order [r, z, n].
        "w_ih": xavier(ks[4], D, 3 * D),
        "w_hh": jax.nn.initializers.orthogonal()(ks[5], (D, 3 * D),
                                                 jnp.float32),
        "b_ih": jnp.zeros((1, 3 * D), jnp.float32),
        "b_hh": jnp.zeros((1, 3 * D), jnp.float32),
        "mlp_w1": kaiming(ks[6], D, H),
        "mlp_b1": jnp.zeros((1, H), jnp.float32),
        "mlp_w2": xavier(ks[7], H, D),
        "mlp_b2": jnp.zeros((1, D), jnp.float32),
    }


# ------------------------------- reference ------------------------------------
def slot_attention_reference(features, params, *, slots=None, num_iter=2,
                             epsilon=1.0):
    HI = lax.Precision.HIGHEST
    p = params
    slots = p["slots_init"] if slots is None else slots
    D = slots.shape[-1]
    scale = float(D) ** -0.5

    f = _layer_norm(features, p["ln_feat_w"], p["ln_feat_b"])
    k = jnp.dot(f, p["wk"], precision=HI)
    v = jnp.dot(f, p["wv"], precision=HI)

    def logits_of(s):
        q = jnp.dot(_layer_norm(s, p["ln_slots_w"], p["ln_slots_b"]),
                    p["wq"], precision=HI)
        return jnp.dot(q, k.T, precision=HI) * scale

    for _ in range(num_iter - 1):
        slots_prev = slots
        attn = _softmax_over_slots(logits_of(slots))
        attn_wm = attn / (jnp.sum(attn, axis=-1, keepdims=True) + epsilon)
        updates = jnp.dot(attn_wm, v, precision=HI)
        gi = jnp.dot(updates, p["w_ih"], precision=HI) + p["b_ih"]
        gh = jnp.dot(slots_prev, p["w_hh"], precision=HI) + p["b_hh"]
        r = _sigmoid(gi[:, :D] + gh[:, :D])
        z = _sigmoid(gi[:, D:2 * D] + gh[:, D:2 * D])
        n = jnp.tanh(gi[:, 2 * D:] + r * gh[:, 2 * D:])
        slots = (1.0 - z) * n + z * slots_prev
        h = jnp.maximum(
            jnp.dot(_layer_norm(slots, p["ln_mlp_w"], p["ln_mlp_b"]),
                    p["mlp_w1"], precision=HI) + p["mlp_b1"], 0.0)
        slots = slots + jnp.dot(h, p["mlp_w2"], precision=HI) + p["mlp_b2"]

    attn = _softmax_over_slots(logits_of(slots))
    return slots, attn.T


if __name__ == "__main__":
    # Small but TPU-friendly shapes: 256 tokens (e.g. a 16x16 feature map),
    # feature/slot dims of 128 (lane-dense), 8 slots (one sublane tile).
    N_TOKENS, FEATURE_SIZE, SLOT_SIZE, NUM_SLOTS = 256, 128, 128, 8

    key = jax.random.PRNGKey(0)
    key, fkey, pkey = jax.random.split(key, 3)
    features = jax.random.normal(fkey, (N_TOKENS, FEATURE_SIZE), jnp.float32)
    params = init_slot_attention_params(pkey, FEATURE_SIZE, SLOT_SIZE,
                                        NUM_SLOTS, mlp_ratio=2)

    slots, attn = slot_attention_forward(features, params, num_iter=2)
    slots, attn = jax.block_until_ready((slots, attn))

    slots_ref, attn_ref = slot_attention_reference(features, params,
                                                   num_iter=2)

    assert slots.shape == (NUM_SLOTS, SLOT_SIZE)
    assert attn.shape == (N_TOKENS, NUM_SLOTS)
    assert jnp.allclose(slots, slots_ref, atol=1e-3, rtol=1e-3), \
        "slots mismatch vs reference"
    assert jnp.allclose(attn, attn_ref, atol=1e-3, rtol=1e-3), \
        "attention mismatch vs reference"

    print("KERNEL_OK")
</pallas_src>

<mosaic_0001>
module attributes {stable_mosaic.version = 11 : i64} {
  func.func @_slot_attention_kernel(%arg0: i32, %arg1: memref<256x128xf32, #tpu.memory_space<vmem>>, %arg2: memref<8x128xf32, #tpu.memory_space<vmem>>, %arg3: memref<1x128xf32, #tpu.memory_space<vmem>>, %arg4: memref<1x128xf32, #tpu.memory_space<vmem>>, %arg5: memref<1x128xf32, #tpu.memory_space<vmem>>, %arg6: memref<1x128xf32, #tpu.memory_space<vmem>>, %arg7: memref<1x128xf32, #tpu.memory_space<vmem>>, %arg8: memref<1x128xf32, #tpu.memory_space<vmem>>, %arg9: memref<128x128xf32, #tpu.memory_space<vmem>>, %arg10: memref<128x128xf32, #tpu.memory_space<vmem>>, %arg11: memref<128x128xf32, #tpu.memory_space<vmem>>, %arg12: memref<128x384xf32, #tpu.memory_space<vmem>>, %arg13: memref<128x384xf32, #tpu.memory_space<vmem>>, %arg14: memref<1x384xf32, #tpu.memory_space<vmem>>, %arg15: memref<1x384xf32, #tpu.memory_space<vmem>>, %arg16: memref<128x256xf32, #tpu.memory_space<vmem>>, %arg17: memref<1x256xf32, #tpu.memory_space<vmem>>, %arg18: memref<256x128xf32, #tpu.memory_space<vmem>>, %arg19: memref<1x128xf32, #tpu.memory_space<vmem>>, %arg20: memref<8x128xf32, #tpu.memory_space<vmem>>, %arg21: memref<8x256xf32, #tpu.memory_space<vmem>>) attributes {dimension_semantics = [#tpu.dimension_semantics<arbitrary>], iteration_bounds = array<i64: 1>, scalar_prefetch = 0 : i64, scratch_operands = 0 : i64, tpu.core_type = #tpu.core_type<tc>, window_params = [{pipeline_mode = #tpu.pipeline_mode<synchronous>, transform_indices = @transform_0, window_bounds = array<i64: 256, 128>}, {pipeline_mode = #tpu.pipeline_mode<synchronous>, transform_indices = @transform_1, window_bounds = array<i64: 8, 128>}, {pipeline_mode = #tpu.pipeline_mode<synchronous>, transform_indices = @transform_2, window_bounds = array<i64: 1, 128>}, {pipeline_mode = #tpu.pipeline_mode<synchronous>, transform_indices = @transform_3, window_bounds = array<i64: 1, 128>}, {pipeline_mode = #tpu.pipeline_mode<synchronous>, transform_indices = @transform_4, window_bounds = array<i64: 1, 128>}, {pipeline_mode = #tpu.pipeline_mode<synchronous>, transform_indices = @transform_5, window_bounds = array<i64: 1, 128>}, {pipeline_mode = #tpu.pipeline_mode<synchronous>, transform_indices = @transform_6, window_bounds = array<i64: 1, 128>}, {pipeline_mode = #tpu.pipeline_mode<synchronous>, transform_indices = @transform_7, window_bounds = array<i64: 1, 128>}, {pipeline_mode = #tpu.pipeline_mode<synchronous>, transform_indices = @transform_8, window_bounds = array<i64: 128, 128>}, {pipeline_mode = #tpu.pipeline_mode<synchronous>, transform_indices = @transform_9, window_bounds = array<i64: 128, 128>}, {pipeline_mode = #tpu.pipeline_mode<synchronous>, transform_indices = @transform_10, window_bounds = array<i64: 128, 128>}, {pipeline_mode = #tpu.pipeline_mode<synchronous>, transform_indices = @transform_11, window_bounds = array<i64: 128, 384>}, {pipeline_mode = #tpu.pipeline_mode<synchronous>, transform_indices = @transform_12, window_bounds = array<i64: 128, 384>}, {pipeline_mode = #tpu.pipeline_mode<synchronous>, transform_indices = @transform_13, window_bounds = array<i64: 1, 384>}, {pipeline_mode = #tpu.pipeline_mode<synchronous>, transform_indices = @transform_14, window_bounds = array<i64: 1, 384>}, {pipeline_mode = #tpu.pipeline_mode<synchronous>, transform_indices = @transform_15, window_bounds = array<i64: 128, 256>}, {pipeline_mode = #tpu.pipeline_mode<synchronous>, transform_indices = @transform_16, window_bounds = array<i64: 1, 256>}, {pipeline_mode = #tpu.pipeline_mode<synchronous>, transform_indices = @transform_17, window_bounds = array<i64: 256, 128>}, {pipeline_mode = #tpu.pipeline_mode<synchronous>, transform_indices = @transform_18, window_bounds = array<i64: 1, 128>}, {pipeline_mode = #tpu.pipeline_mode<synchronous>, transform_indices = @transform_19, window_bounds = array<i64: 8, 128>}, {pipeline_mode = #tpu.pipeline_mode<synchronous>, transform_indices = @transform_20, window_bounds = array<i64: 8, 256>}]} {
    %c0 = arith.constant 0 : index
    %c0_0 = arith.constant 0 : index
    %0 = vector.load %arg1[%c0, %c0_0] : memref<256x128xf32, #tpu.memory_space<vmem>>, vector<256x128xf32>
    %c0_1 = arith.constant 0 : index
    %c0_2 = arith.constant 0 : index
    %1 = vector.load %arg3[%c0_1, %c0_2] : memref<1x128xf32, #tpu.memory_space<vmem>>, vector<1x128xf32>
    %c0_3 = arith.constant 0 : index
    %c0_4 = arith.constant 0 : index
    %2 = vector.load %arg4[%c0_3, %c0_4] : memref<1x128xf32, #tpu.memory_space<vmem>>, vector<1x128xf32>
    %cst = arith.constant dense<0.000000e+00> : vector<256xf32>
    %3 = vector.multi_reduction <add>, %0, %cst [1] : vector<256x128xf32> to vector<256xf32>
    %4 = vector.shape_cast %3 : vector<256xf32> to vector<256x1xf32>
    %cst_5 = arith.constant 1.280000e+02 : f32
    %5 = vector.broadcast %cst_5 : f32 to vector<256x1xf32>
    %6 = arith.divf %4, %5 : vector<256x1xf32>
    %7 = vector.broadcast %6 : vector<256x1xf32> to vector<256x128xf32>
    %8 = arith.subf %0, %7 : vector<256x128xf32>
    %9 = arith.mulf %8, %8 : vector<256x128xf32>
    %cst_6 = arith.constant dense<0.000000e+00> : vector<256xf32>
    %10 = vector.multi_reduction <add>, %9, %cst_6 [1] : vector<256x128xf32> to vector<256xf32>
    %11 = vector.shape_cast %10 : vector<256xf32> to vector<256x1xf32>
    %cst_7 = arith.constant 1.280000e+02 : f32
    %12 = vector.broadcast %cst_7 : f32 to vector<256x1xf32>
    %13 = arith.divf %11, %12 : vector<256x1xf32>
    %cst_8 = arith.constant 9.99999974E-6 : f32
    %14 = vector.broadcast %cst_8 : f32 to vector<256x1xf32>
    %15 = arith.addf %13, %14 : vector<256x1xf32>
    %16 = math.rsqrt %15 : vector<256x1xf32>
    %17 = vector.broadcast %16 : vector<256x1xf32> to vector<256x128xf32>
    %18 = arith.mulf %8, %17 : vector<256x128xf32>
    %19 = vector.broadcast %1 : vector<1x128xf32> to vector<256x128xf32>
    %20 = arith.mulf %18, %19 : vector<256x128xf32>
    %21 = vector.broadcast %2 : vector<1x128xf32> to vector<256x128xf32>
    %22 = arith.addf %20, %21 : vector<256x128xf32>
    %c0_9 = arith.constant 0 : index
    %c0_10 = arith.constant 0 : index
    %23 = vector.load %arg10[%c0_9, %c0_10] : memref<128x128xf32, #tpu.memory_space<vmem>>, vector<128x128xf32>
    %cst_11 = arith.constant dense<0.000000e+00> : vector<256x128xf32>
    %24 = tpu.matmul %22, %23, %cst_11 {dimension_numbers = #tpu.dot_dimension_numbers<[1], [0], [0], [1], [0, 0, 1, 1], [], []>} : vector<256x128xf32>, vector<128x128xf32>, vector<256x128xf32> -> vector<256x128xf32>
    %c0_12 = arith.constant 0 : index
    %c0_13 = arith.constant 0 : index
    %25 = vector.load %arg11[%c0_12, %c0_13] : memref<128x128xf32, #tpu.memory_space<vmem>>, vector<128x128xf32>
    %cst_14 = arith.constant dense<0.000000e+00> : vector<256x128xf32>
    %26 = tpu.matmul %22, %25, %cst_14 {dimension_numbers = #tpu.dot_dimension_numbers<[1], [0], [0], [1], [0, 0, 1, 1], [], []>} : vector<256x128xf32>, vector<128x128xf32>, vector<256x128xf32> -> vector<256x128xf32>
    %c0_15 = arith.constant 0 : index
    %c0_16 = arith.constant 0 : index
    %27 = vector.load %arg5[%c0_15, %c0_16] : memref<1x128xf32, #tpu.memory_space<vmem>>, vector<1x128xf32>
    %c0_17 = arith.constant 0 : index
    %c0_18 = arith.constant 0 : index
    %28 = vector.load %arg6[%c0_17, %c0_18] : memref<1x128xf32, #tpu.memory_space<vmem>>, vector<1x128xf32>
    %c0_19 = arith.constant 0 : index
    %c0_20 = arith.constant 0 : index
    %29 = vector.load %arg9[%c0_19, %c0_20] : memref<128x128xf32, #tpu.memory_space<vmem>>, vector<128x128xf32>
    %c0_21 = arith.constant 0 : index
    %c0_22 = arith.constant 0 : index
    %30 = vector.load %arg2[%c0_21, %c0_22] : memref<8x128xf32, #tpu.memory_space<vmem>>, vector<8x128xf32>
    %cst_23 = arith.constant dense<0.000000e+00> : vector<8xf32>
    %31 = vector.multi_reduction <add>, %30, %cst_23 [1] : vector<8x128xf32> to vector<8xf32>
    %32 = vector.shape_cast %31 : vector<8xf32> to vector<8x1xf32>
    %cst_24 = arith.constant 1.280000e+02 : f32
    %33 = vector.broadcast %cst_24 : f32 to vector<8x1xf32>
    %34 = arith.divf %32, %33 : vector<8x1xf32>
    %35 = vector.broadcast %34 : vector<8x1xf32> to vector<8x128xf32>
    %36 = arith.subf %30, %35 : vector<8x128xf32>
    %37 = arith.mulf %36, %36 : vector<8x128xf32>
    %cst_25 = arith.constant dense<0.000000e+00> : vector<8xf32>
    %38 = vector.multi_reduction <add>, %37, %cst_25 [1] : vector<8x128xf32> to vector<8xf32>
    %39 = vector.shape_cast %38 : vector<8xf32> to vector<8x1xf32>
    %cst_26 = arith.constant 1.280000e+02 : f32
    %40 = vector.broadcast %cst_26 : f32 to vector<8x1xf32>
    %41 = arith.divf %39, %40 : vector<8x1xf32>
    %cst_27 = arith.constant 9.99999974E-6 : f32
    %42 = vector.broadcast %cst_27 : f32 to vector<8x1xf32>
    %43 = arith.addf %41, %42 : vector<8x1xf32>
    %44 = math.rsqrt %43 : vector<8x1xf32>
    %45 = vector.broadcast %44 : vector<8x1xf32> to vector<8x128xf32>
    %46 = arith.mulf %36, %45 : vector<8x128xf32>
    %47 = vector.broadcast %27 : vector<1x128xf32> to vector<8x128xf32>
    %48 = arith.mulf %46, %47 : vector<8x128xf32>
    %49 = vector.broadcast %28 : vector<1x128xf32> to vector<8x128xf32>
    %50 = arith.addf %48, %49 : vector<8x128xf32>
    %cst_28 = arith.constant dense<0.000000e+00> : vector<8x128xf32>
    %51 = tpu.matmul %50, %29, %cst_28 {dimension_numbers = #tpu.dot_dimension_numbers<[1], [0], [0], [1], [0, 0, 1, 1], [], []>} : vector<8x128xf32>, vector<128x128xf32>, vector<8x128xf32> -> vector<8x128xf32>
    %cst_29 = arith.constant dense<0.000000e+00> : vector<8x256xf32>
    %52 = tpu.matmul %51, %24, %cst_29 {dimension_numbers = #tpu.dot_dimension_numbers<[1], [1], [0], [0], [0, 0, 1, 0], [], []>} : vector<8x128xf32>, vector<256x128xf32>, vector<8x256xf32> -> vector<8x256xf32>
    %cst_30 = arith.constant 0.0883883461 : f32
    %53 = vector.broadcast %cst_30 : f32 to vector<8x256xf32>
    %54 = arith.mulf %52, %53 : vector<8x256xf32>
    %cst_31 = arith.constant dense<0xFF800000> : vector<256xf32>
    %55 = vector.multi_reduction <maximumf>, %54, %cst_31 [0] : vector<8x256xf32> to vector<256xf32>
    %56 = vector.shape_cast %55 : vector<256xf32> to vector<1x256xf32>
    %57 = vector.broadcast %56 : vector<1x256xf32> to vector<8x256xf32>
    %58 = arith.subf %54, %57 : vector<8x256xf32>
    %59 = math.exp %58 : vector<8x256xf32>
    %cst_32 = arith.constant dense<0.000000e+00> : vector<256xf32>
    %60 = vector.multi_reduction <add>, %59, %cst_32 [0] : vector<8x256xf32> to vector<256xf32>
    %61 = vector.shape_cast %60 : vector<256xf32> to vector<1x256xf32>
    %62 = vector.broadcast %61 : vector<1x256xf32> to vector<8x256xf32>
    %63 = arith.divf %59, %62 : vector<8x256xf32>
    %cst_33 = arith.constant dense<0.000000e+00> : vector<8xf32>
    %64 = vector.multi_reduction <add>, %63, %cst_33 [1] : vector<8x256xf32> to vector<8xf32>
    %65 = vector.shape_cast %64 : vector<8xf32> to vector<8x1xf32>
    %cst_34 = arith.constant 1.000000e+00 : f32
    %66 = vector.broadcast %cst_34 : f32 to vector<8x1xf32>
    %67 = arith.addf %65, %66 : vector<8x1xf32>
    %68 = vector.broadcast %67 : vector<8x1xf32> to vector<8x256xf32>
    %69 = arith.divf %63, %68 : vector<8x256xf32>
    %cst_35 = arith.constant dense<0.000000e+00> : vector<8x128xf32>
    %70 = tpu.matmul %69, %26, %cst_35 {dimension_numbers = #tpu.dot_dimension_numbers<[1], [0], [0], [1], [0, 0, 1, 1], [], []>} : vector<8x256xf32>, vector<256x128xf32>, vector<8x128xf32> -> vector<8x128xf32>
    %c0_36 = arith.constant 0 : index
    %c0_37 = arith.constant 0 : index
    %71 = vector.load %arg12[%c0_36, %c0_37] : memref<128x384xf32, #tpu.memory_space<vmem>>, vector<128x384xf32>
    %cst_38 = arith.constant dense<0.000000e+00> : vector<8x384xf32>
    %72 = tpu.matmul %70, %71, %cst_38 {dimension_numbers = #tpu.dot_dimension_numbers<[1], [0], [0], [1], [0, 0, 1, 1], [], []>} : vector<8x128xf32>, vector<128x384xf32>, vector<8x384xf32> -> vector<8x384xf32>
    %c0_39 = arith.constant 0 : index
    %c0_40 = arith.constant 0 : index
    %73 = vector.load %arg14[%c0_39, %c0_40] : memref<1x384xf32, #tpu.memory_space<vmem>>, vector<1x384xf32>
    %74 = vector.broadcast %73 : vector<1x384xf32> to vector<8x384xf32>
    %75 = arith.addf %72, %74 : vector<8x384xf32>
    %c0_41 = arith.constant 0 : index
    %c0_42 = arith.constant 0 : index
    %76 = vector.load %arg13[%c0_41, %c0_42] : memref<128x384xf32, #tpu.memory_space<vmem>>, vector<128x384xf32>
    %cst_43 = arith.constant dense<0.000000e+00> : vector<8x384xf32>
    %77 = tpu.matmul %30, %76, %cst_43 {dimension_numbers = #tpu.dot_dimension_numbers<[1], [0], [0], [1], [0, 0, 1, 1], [], []>} : vector<8x128xf32>, vector<128x384xf32>, vector<8x384xf32> -> vector<8x384xf32>
    %c0_44 = arith.constant 0 : index
    %c0_45 = arith.constant 0 : index
    %78 = vector.load %arg15[%c0_44, %c0_45] : memref<1x384xf32, #tpu.memory_space<vmem>>, vector<1x384xf32>
    %79 = vector.broadcast %78 : vector<1x384xf32> to vector<8x384xf32>
    %80 = arith.addf %77, %79 : vector<8x384xf32>
    %81 = vector.extract_strided_slice %75 {offsets = [0, 0], sizes = [8, 128], strides = [1, 1]} : vector<8x384xf32> to vector<8x128xf32>
    %82 = vector.extract_strided_slice %80 {offsets = [0, 0], sizes = [8, 128], strides = [1, 1]} : vector<8x384xf32> to vector<8x128xf32>
    %83 = arith.addf %81, %82 : vector<8x128xf32>
    %cst_46 = arith.constant 0.000000e+00 : f32
    %84 = vector.broadcast %cst_46 : f32 to vector<8x128xf32>
    %85 = arith.subf %84, %83 : vector<8x128xf32>
    %86 = math.exp %85 : vector<8x128xf32>
    %cst_47 = arith.constant 1.000000e+00 : f32
    %87 = vector.broadcast %cst_47 : f32 to vector<8x128xf32>
    %88 = arith.addf %87, %86 : vector<8x128xf32>
    %cst_48 = arith.constant 1.000000e+00 : f32
    %89 = vector.broadcast %cst_48 : f32 to vector<8x128xf32>
    %90 = arith.divf %89, %88 : vector<8x128xf32>
    %91 = vector.extract_strided_slice %75 {offsets = [0, 128], sizes = [8, 128], strides = [1, 1]} : vector<8x384xf32> to vector<8x128xf32>
    %92 = vector.extract_strided_slice %80 {offsets = [0, 128], sizes = [8, 128], strides = [1, 1]} : vector<8x384xf32> to vector<8x128xf32>
    %93 = arith.addf %91, %92 : vector<8x128xf32>
    %cst_49 = arith.constant 0.000000e+00 : f32
    %94 = vector.broadcast %cst_49 : f32 to vector<8x128xf32>
    %95 = arith.subf %94, %93 : vector<8x128xf32>
    %96 = math.exp %95 : vector<8x128xf32>
    %cst_50 = arith.constant 1.000000e+00 : f32
    %97 = vector.broadcast %cst_50 : f32 to vector<8x128xf32>
    %98 = arith.addf %97, %96 : vector<8x128xf32>
    %cst_51 = arith.constant 1.000000e+00 : f32
    %99 = vector.broadcast %cst_51 : f32 to vector<8x128xf32>
    %100 = arith.divf %99, %98 : vector<8x128xf32>
    %101 = vector.extract_strided_slice %75 {offsets = [0, 256], sizes = [8, 128], strides = [1, 1]} : vector<8x384xf32> to vector<8x128xf32>
    %102 = vector.extract_strided_slice %80 {offsets = [0, 256], sizes = [8, 128], strides = [1, 1]} : vector<8x384xf32> to vector<8x128xf32>
    %103 = arith.mulf %90, %102 : vector<8x128xf32>
    %104 = arith.addf %101, %103 : vector<8x128xf32>
    %105 = math.tanh %104 : vector<8x128xf32>
    %cst_52 = arith.constant 1.000000e+00 : f32
    %106 = vector.broadcast %cst_52 : f32 to vector<8x128xf32>
    %107 = arith.subf %106, %100 : vector<8x128xf32>
    %108 = arith.mulf %107, %105 : vector<8x128xf32>
    %109 = arith.mulf %100, %30 : vector<8x128xf32>
    %110 = arith.addf %108, %109 : vector<8x128xf32>
    %c0_53 = arith.constant 0 : index
    %c0_54 = arith.constant 0 : index
    %111 = vector.load %arg7[%c0_53, %c0_54] : memref<1x128xf32, #tpu.memory_space<vmem>>, vector<1x128xf32>
    %c0_55 = arith.constant 0 : index
    %c0_56 = arith.constant 0 : index
    %112 = vector.load %arg8[%c0_55, %c0_56] : memref<1x128xf32, #tpu.memory_space<vmem>>, vector<1x128xf32>
    %cst_57 = arith.constant dense<0.000000e+00> : vector<8xf32>
    %113 = vector.multi_reduction <add>, %110, %cst_57 [1] : vector<8x128xf32> to vector<8xf32>
    %114 = vector.shape_cast %113 : vector<8xf32> to vector<8x1xf32>
    %cst_58 = arith.constant 1.280000e+02 : f32
    %115 = vector.broadcast %cst_58 : f32 to vector<8x1xf32>
    %116 = arith.divf %114, %115 : vector<8x1xf32>
    %117 = vector.broadcast %116 : vector<8x1xf32> to vector<8x128xf32>
    %118 = arith.subf %110, %117 : vector<8x128xf32>
    %119 = arith.mulf %118, %118 : vector<8x128xf32>
    %cst_59 = arith.constant dense<0.000000e+00> : vector<8xf32>
    %120 = vector.multi_reduction <add>, %119, %cst_59 [1] : vector<8x128xf32> to vector<8xf32>
    %121 = vector.shape_cast %120 : vector<8xf32> to vector<8x1xf32>
    %cst_60 = arith.constant 1.280000e+02 : f32
    %122 = vector.broadcast %cst_60 : f32 to vector<8x1xf32>
    %123 = arith.divf %121, %122 : vector<8x1xf32>
    %cst_61 = arith.constant 9.99999974E-6 : f32
    %124 = vector.broadcast %cst_61 : f32 to vector<8x1xf32>
    %125 = arith.addf %123, %124 : vector<8x1xf32>
    %126 = math.rsqrt %125 : vector<8x1xf32>
    %127 = vector.broadcast %126 : vector<8x1xf32> to vector<8x128xf32>
    %128 = arith.mulf %118, %127 : vector<8x128xf32>
    %129 = vector.broadcast %111 : vector<1x128xf32> to vector<8x128xf32>
    %130 = arith.mulf %128, %129 : vector<8x128xf32>
    %131 = vector.broadcast %112 : vector<1x128xf32> to vector<8x128xf32>
    %132 = arith.addf %130, %131 : vector<8x128xf32>
    %c0_62 = arith.constant 0 : index
    %c0_63 = arith.constant 0 : index
    %133 = vector.load %arg16[%c0_62, %c0_63] : memref<128x256xf32, #tpu.memory_space<vmem>>, vector<128x256xf32>
    %cst_64 = arith.constant dense<0.000000e+00> : vector<8x256xf32>
    %134 = tpu.matmul %132, %133, %cst_64 {dimension_numbers = #tpu.dot_dimension_numbers<[1], [0], [0], [1], [0, 0, 1, 1], [], []>} : vector<8x128xf32>, vector<128x256xf32>, vector<8x256xf32> -> vector<8x256xf32>
    %c0_65 = arith.constant 0 : index
    %c0_66 = arith.constant 0 : index
    %135 = vector.load %arg17[%c0_65, %c0_66] : memref<1x256xf32, #tpu.memory_space<vmem>>, vector<1x256xf32>
    %136 = vector.broadcast %135 : vector<1x256xf32> to vector<8x256xf32>
    %137 = arith.addf %134, %136 : vector<8x256xf32>
    %cst_67 = arith.constant 0.000000e+00 : f32
    %138 = vector.broadcast %cst_67 : f32 to vector<8x256xf32>
    %139 = arith.maximumf %137, %138 : vector<8x256xf32>
    %c0_68 = arith.constant 0 : index
    %c0_69 = arith.constant 0 : index
    %140 = vector.load %arg18[%c0_68, %c0_69] : memref<256x128xf32, #tpu.memory_space<vmem>>, vector<256x128xf32>
    %cst_70 = arith.constant dense<0.000000e+00> : vector<8x128xf32>
    %141 = tpu.matmul %139, %140, %cst_70 {dimension_numbers = #tpu.dot_dimension_numbers<[1], [0], [0], [1], [0, 0, 1, 1], [], []>} : vector<8x256xf32>, vector<256x128xf32>, vector<8x128xf32> -> vector<8x128xf32>
    %142 = arith.addf %110, %141 : vector<8x128xf32>
    %c0_71 = arith.constant 0 : index
    %c0_72 = arith.constant 0 : index
    %143 = vector.load %arg19[%c0_71, %c0_72] : memref<1x128xf32, #tpu.memory_space<vmem>>, vector<1x128xf32>
    %144 = vector.broadcast %143 : vector<1x128xf32> to vector<8x128xf32>
    %145 = arith.addf %142, %144 : vector<8x128xf32>
    %cst_73 = arith.constant dense<0.000000e+00> : vector<8xf32>
    %146 = vector.multi_reduction <add>, %145, %cst_73 [1] : vector<8x128xf32> to vector<8xf32>
    %147 = vector.shape_cast %146 : vector<8xf32> to vector<8x1xf32>
    %cst_74 = arith.constant 1.280000e+02 : f32
    %148 = vector.broadcast %cst_74 : f32 to vector<8x1xf32>
    %149 = arith.divf %147, %148 : vector<8x1xf32>
    %150 = vector.broadcast %149 : vector<8x1xf32> to vector<8x128xf32>
    %151 = arith.subf %145, %150 : vector<8x128xf32>
    %152 = arith.mulf %151, %151 : vector<8x128xf32>
    %cst_75 = arith.constant dense<0.000000e+00> : vector<8xf32>
    %153 = vector.multi_reduction <add>, %152, %cst_75 [1] : vector<8x128xf32> to vector<8xf32>
    %154 = vector.shape_cast %153 : vector<8xf32> to vector<8x1xf32>
    %cst_76 = arith.constant 1.280000e+02 : f32
    %155 = vector.broadcast %cst_76 : f32 to vector<8x1xf32>
    %156 = arith.divf %154, %155 : vector<8x1xf32>
    %cst_77 = arith.constant 9.99999974E-6 : f32
    %157 = vector.broadcast %cst_77 : f32 to vector<8x1xf32>
    %158 = arith.addf %156, %157 : vector<8x1xf32>
    %159 = math.rsqrt %158 : vector<8x1xf32>
    %160 = vector.broadcast %159 : vector<8x1xf32> to vector<8x128xf32>
    %161 = arith.mulf %151, %160 : vector<8x128xf32>
    %162 = vector.broadcast %27 : vector<1x128xf32> to vector<8x128xf32>
    %163 = arith.mulf %161, %162 : vector<8x128xf32>
    %164 = vector.broadcast %28 : vector<1x128xf32> to vector<8x128xf32>
    %165 = arith.addf %163, %164 : vector<8x128xf32>
    %cst_78 = arith.constant dense<0.000000e+00> : vector<8x128xf32>
    %166 = tpu.matmul %165, %29, %cst_78 {dimension_numbers = #tpu.dot_dimension_numbers<[1], [0], [0], [1], [0, 0, 1, 1], [], []>} : vector<8x128xf32>, vector<128x128xf32>, vector<8x128xf32> -> vector<8x128xf32>
    %cst_79 = arith.constant dense<0.000000e+00> : vector<8x256xf32>
    %167 = tpu.matmul %166, %24, %cst_79 {dimension_numbers = #tpu.dot_dimension_numbers<[1], [1], [0], [0], [0, 0, 1, 0], [], []>} : vector<8x128xf32>, vector<256x128xf32>, vector<8x256xf32> -> vector<8x256xf32>
    %cst_80 = arith.constant 0.0883883461 : f32
    %168 = vector.broadcast %cst_80 : f32 to vector<8x256xf32>
    %169 = arith.mulf %167, %168 : vector<8x256xf32>
    %cst_81 = arith.constant dense<0xFF800000> : vector<256xf32>
    %170 = vector.multi_reduction <maximumf>, %169, %cst_81 [0] : vector<8x256xf32> to vector<256xf32>
    %171 = vector.shape_cast %170 : vector<256xf32> to vector<1x256xf32>
    %172 = vector.broadcast %171 : vector<1x256xf32> to vector<8x256xf32>
    %173 = arith.subf %169, %172 : vector<8x256xf32>
    %174 = math.exp %173 : vector<8x256xf32>
    %cst_82 = arith.constant dense<0.000000e+00> : vector<256xf32>
    %175 = vector.multi_reduction <add>, %174, %cst_82 [0] : vector<8x256xf32> to vector<256xf32>
    %176 = vector.shape_cast %175 : vector<256xf32> to vector<1x256xf32>
    %177 = vector.broadcast %176 : vector<1x256xf32> to vector<8x256xf32>
    %178 = arith.divf %174, %177 : vector<8x256xf32>
    %c0_83 = arith.constant 0 : index
    %c0_84 = arith.constant 0 : index
    %179 = vector.load %arg20[%c0_83, %c0_84] : memref<8x128xf32, #tpu.memory_space<vmem>>, vector<8x128xf32>
    tpu.vector_store %arg20[%c0_83, %c0_84], %145 {strides = array<i32>} : memref<8x128xf32, #tpu.memory_space<vmem>>, vector<8x128xf32>,
    %c0_85 = arith.constant 0 : index
    %c0_86 = arith.constant 0 : index
    %180 = vector.load %arg21[%c0_85, %c0_86] : memref<8x256xf32, #tpu.memory_space<vmem>>, vector<8x256xf32>
    tpu.vector_store %arg21[%c0_85, %c0_86], %178 {strides = array<i32>} : memref<8x256xf32, #tpu.memory_space<vmem>>, vector<8x256xf32>,
    return
  }
  func.func @transform_0(%arg0: i32) -> (i32, i32) {
    %c0_i32 = arith.constant 0 : i32
    %c0_i32_0 = arith.constant 0 : i32
    %c0_i32_1 = arith.constant 0 : i32
    return %c0_i32, %c0_i32_0 : i32, i32
  }
  func.func @transform_1(%arg0: i32) -> (i32, i32) {
    %c0_i32 = arith.constant 0 : i32
    %c0_i32_0 = arith.constant 0 : i32
    %c0_i32_1 = arith.constant 0 : i32
    return %c0_i32, %c0_i32_0 : i32, i32
  }
  func.func @transform_2(%arg0: i32) -> (i32, i32) {
    %c0_i32 = arith.constant 0 : i32
    %c0_i32_0 = arith.constant 0 : i32
    %c0_i32_1 = arith.constant 0 : i32
    return %c0_i32, %c0_i32_0 : i32, i32
  }
  func.func @transform_3(%arg0: i32) -> (i32, i32) {
    %c0_i32 = arith.constant 0 : i32
    %c0_i32_0 = arith.constant 0 : i32
    %c0_i32_1 = arith.constant 0 : i32
    return %c0_i32, %c0_i32_0 : i32, i32
  }
  func.func @transform_4(%arg0: i32) -> (i32, i32) {
    %c0_i32 = arith.constant 0 : i32
    %c0_i32_0 = arith.constant 0 : i32
    %c0_i32_1 = arith.constant 0 : i32
    return %c0_i32, %c0_i32_0 : i32, i32
  }
  func.func @transform_5(%arg0: i32) -> (i32, i32) {
    %c0_i32 = arith.constant 0 : i32
    %c0_i32_0 = arith.constant 0 : i32
    %c0_i32_1 = arith.constant 0 : i32
    return %c0_i32, %c0_i32_0 : i32, i32
  }
  func.func @transform_6(%arg0: i32) -> (i32, i32) {
    %c0_i32 = arith.constant 0 : i32
    %c0_i32_0 = arith.constant 0 : i32
    %c0_i32_1 = arith.constant 0 : i32
    return %c0_i32, %c0_i32_0 : i32, i32
  }
  func.func @transform_7(%arg0: i32) -> (i32, i32) {
    %c0_i32 = arith.constant 0 : i32
    %c0_i32_0 = arith.constant 0 : i32
    %c0_i32_1 = arith.constant 0 : i32
    return %c0_i32, %c0_i32_0 : i32, i32
  }
  func.func @transform_8(%arg0: i32) -> (i32, i32) {
    %c0_i32 = arith.constant 0 : i32
    %c0_i32_0 = arith.constant 0 : i32
    %c0_i32_1 = arith.constant 0 : i32
    return %c0_i32, %c0_i32_0 : i32, i32
  }
  func.func @transform_9(%arg0: i32) -> (i32, i32) {
    %c0_i32 = arith.constant 0 : i32
    %c0_i32_0 = arith.constant 0 : i32
    %c0_i32_1 = arith.constant 0 : i32
    return %c0_i32, %c0_i32_0 : i32, i32
  }
  func.func @transform_10(%arg0: i32) -> (i32, i32) {
    %c0_i32 = arith.constant 0 : i32
    %c0_i32_0 = arith.constant 0 : i32
    %c0_i32_1 = arith.constant 0 : i32
    return %c0_i32, %c0_i32_0 : i32, i32
  }
  func.func @transform_11(%arg0: i32) -> (i32, i32) {
    %c0_i32 = arith.constant 0 : i32
    %c0_i32_0 = arith.constant 0 : i32
    %c0_i32_1 = arith.constant 0 : i32
    return %c0_i32, %c0_i32_0 : i32, i32
  }
  func.func @transform_12(%arg0: i32) -> (i32, i32) {
    %c0_i32 = arith.constant 0 : i32
    %c0_i32_0 = arith.constant 0 : i32
    %c0_i32_1 = arith.constant 0 : i32
    return %c0_i32, %c0_i32_0 : i32, i32
  }
  func.func @transform_13(%arg0: i32) -> (i32, i32) {
    %c0_i32 = arith.constant 0 : i32
    %c0_i32_0 = arith.constant 0 : i32
    %c0_i32_1 = arith.constant 0 : i32
    return %c0_i32, %c0_i32_0 : i32, i32
  }
  func.func @transform_14(%arg0: i32) -> (i32, i32) {
    %c0_i32 = arith.constant 0 : i32
    %c0_i32_0 = arith.constant 0 : i32
    %c0_i32_1 = arith.constant 0 : i32
    return %c0_i32, %c0_i32_0 : i32, i32
  }
  func.func @transform_15(%arg0: i32) -> (i32, i32) {
    %c0_i32 = arith.constant 0 : i32
    %c0_i32_0 = arith.constant 0 : i32
    %c0_i32_1 = arith.constant 0 : i32
    return %c0_i32, %c0_i32_0 : i32, i32
  }
  func.func @transform_16(%arg0: i32) -> (i32, i32) {
    %c0_i32 = arith.constant 0 : i32
    %c0_i32_0 = arith.constant 0 : i32
    %c0_i32_1 = arith.constant 0 : i32
    return %c0_i32, %c0_i32_0 : i32, i32
  }
  func.func @transform_17(%arg0: i32) -> (i32, i32) {
    %c0_i32 = arith.constant 0 : i32
    %c0_i32_0 = arith.constant 0 : i32
    %c0_i32_1 = arith.constant 0 : i32
    return %c0_i32, %c0_i32_0 : i32, i32
  }
  func.func @transform_18(%arg0: i32) -> (i32, i32) {
    %c0_i32 = arith.constant 0 : i32
    %c0_i32_0 = arith.constant 0 : i32
    %c0_i32_1 = arith.constant 0 : i32
    return %c0_i32, %c0_i32_0 : i32, i32
  }
  func.func @transform_19(%arg0: i32) -> (i32, i32) {
    %c0_i32 = arith.constant 0 : i32
    %c0_i32_0 = arith.constant 0 : i32
    %c0_i32_1 = arith.constant 0 : i32
    return %c0_i32, %c0_i32_0 : i32, i32
  }
  func.func @transform_20(%arg0: i32) -> (i32, i32) {
    %c0_i32 = arith.constant 0 : i32
    %c0_i32_0 = arith.constant 0 : i32
    %c0_i32_1 = arith.constant 0 : i32
    return %c0_i32, %c0_i32_0 : i32, i32
  }
}

</mosaic_0001>

<bundles_post_ra>
// kernel: tpu_custom_call.1
= control target key start
LH: loop header
LB: loop body
LE: loop exit
PB: predicated region body
PF: predicated region fallthrough
CT: control target
= control target key end

     0   :  { %s4699_s0 = inlined_call_operand.hbm [shape: f32[256,128], index: 0, kind: input, shape index: {}]   ;;  %s4700_s1 = inlined_call_operand.hbm [shape: f32[8,128], index: 1, kind: input, shape index: {}]   ;;  %s4701_s2 = inlined_call_operand.vmem [shape: f32[1,128], index: 2, kind: input, shape index: {}]   ;;  %s4702_s3 = inlined_call_operand.vmem [shape: f32[1,128], index: 3, kind: input, shape index: {}]   ;;  %s4703_s4 = inlined_call_operand.vmem [shape: f32[1,128], index: 4, kind: input, shape index: {}]   ;;  %s4704_s5 = inlined_call_operand.vmem [shape: f32[1,128], index: 5, kind: input, shape index: {}]   ;;  %s4705_s6 = inlined_call_operand.vmem [shape: f32[1,128], index: 6, kind: input, shape index: {}]   ;;  %s4706_s7 = inlined_call_operand.vmem [shape: f32[1,128], index: 7, kind: input, shape index: {}]   ;;  %s4707_s8 = inlined_call_operand.hbm [shape: f32[128,128], index: 8, kind: input, shape index: {}]   ;;  %s4708_s9 = inlined_call_operand.hbm [shape: f32[128,128], index: 9, kind: input, shape index: {}]   ;;  %s4709_s10 = inlined_call_operand.hbm [shape: f32[128,128], index: 10, kind: input, shape index: {}]   ;;  %s4710_s11 = inlined_call_operand.hbm [shape: f32[128,384], index: 11, kind: input, shape index: {}]   ;;  %s4711_s12 = inlined_call_operand.hbm [shape: f32[128,384], index: 12, kind: input, shape index: {}]   ;;  %s4712_s13 = inlined_call_operand.vmem [shape: f32[1,384], index: 13, kind: input, shape index: {}]   ;;  %s4713_s14 = inlined_call_operand.vmem [shape: f32[1,384], index: 14, kind: input, shape index: {}]   ;;  %s4714_s15 = inlined_call_operand.hbm [shape: f32[128,256], index: 15, kind: input, shape index: {}]   ;;  %s4715_s16 = inlined_call_operand.vmem [shape: f32[1,256], index: 16, kind: input, shape index: {}]   ;;  %s4716_s17 = inlined_call_operand.hbm [shape: f32[256,128], index: 17, kind: input, shape index: {}]   ;;  %s4717_s18 = inlined_call_operand.vmem [shape: f32[1,128], index: 18, kind: input, shape index: {}]   ;;  %s4718_s19 = inlined_call_operand.hbm [shape: f32[8,128], index: 19, kind: output, shape index: {0}]   ;;  %s4719_s20 = inlined_call_operand.hbm [shape: f32[8,256], index: 20, kind: output, shape index: {1}]  }
   0x1   :  { %4729 = sst [smem:[#allocation27_spill]] %s4699_s0 }
   0x2   :  { %4730 = sst [smem:[#allocation28_spill]] %s4700_s1 }
   0x3   :  { %4731 = sst [smem:[#allocation29_spill]] %s4701_s2 }
   0x4   :  { %4732 = sst [smem:[#allocation30_spill]] %s4702_s3 }
   0x5   :  { %4733 = sst [smem:[#allocation31_spill]] %s4703_s4 }
   0x6   :  { %26 = vsyncpa [#allocation3], 0 }
   0x7   :  { %27 = vsyncpa [#allocation6], 0 }
   0x8   :  { %28 = vsyncpa [#allocation9], 0 }
   0x9   :  { %29 = vsyncpa [#allocation12], 0 }
   0xa   :  { %30 = vsyncpa [#allocation15], 0 }
   0xb   :  { %31 = vsyncpa [#allocation4], 0 }
   0xc   :  { %32 = vsyncpa [#allocation19], 0  ;;  %s3735_s1 = smov [#allocation5]   ;;  %s4734_s2 = sld [smem:[#allocation28_spill]] }
   0xd   :  { %s51_s22 = sshll.u32 %s3735_s1, 4  ;;  %s52_s22 = int_to_ptr.vmem [resolvable:$true] %s51_s22 }
  0x12   :  { %s3479_s25 = scalar_lea.hbm %s4734_s2, 128 }
  0x13   :  { %p3480_p0 = scmp.ne.s32.totalorder %s4734_s2, %s3479_s25  ;;  %p3483_p1 = scmp.lt.u32.totalorder %s3479_s25, %s4734_s2 }
  0x15   :  { %p3485_p2 = pnand %p3483_p1, %p3480_p0 }
  0x17   :  { %3488 = shalt.err (!%p3485_p2)
}
  0x18   :  { %s3489_s4 = scalar_lea.vmem %s52_s22, 128  ;;  %p3494_p4 = scmp.lt.s32.totalorder %s52_s22, %s52_s22 }
  0x19   :  { %p3490_p3 = scmp.ne.s32.totalorder %s52_s22, %s3489_s4  ;;  %p3495_p5 = scmp.lt.s32.totalorder %s3489_s4, %s3489_s4 }
  0x1b   :  { %p3496_p6 = por %p3495_p5, %p3494_p4 }
  0x1d   :  { %p3497_p7 = pnand %p3496_p6, %p3490_p3 }
  0x1f   :  { %3500 = shalt.err (!%p3497_p7)
}
  0x20   :  { %54 = dma.hbm_to_vmem [thread:$0]  %s4734_s2, 128, %s52_s22, [#allocation6]  }
  0x21   :  { %s3736_s0 = smov [#allocation8]   ;;  %s3737_s1 = smov [#allocation11]  }
  0x22   :  { %s84_s21 = sshll.u32 %s3736_s0, 4  ;;  %s108_s23 = sshll.u32 %s3737_s1, 4  ;;  %s85_s21 = int_to_ptr.vmem [resolvable:$true] %s84_s21  ;;  %s109_s23 = int_to_ptr.vmem [resolvable:$true] %s108_s23 }
  0x23   :  { %s3501_s3 = scalar_lea.hbm %s4708_s9, 2048 }
  0x24   :  { %p3502_p8 = scmp.ne.s32.totalorder %s4708_s9, %s3501_s3  ;;  %p3505_p9 = scmp.lt.u32.totalorder %s3501_s3, %s4708_s9 }
  0x26   :  { %p3507_p10 = pnand %p3505_p9, %p3502_p8 }
  0x28   :  { %3510 = shalt.err (!%p3507_p10)
}
  0x29   :  { %s3511_s22 = scalar_lea.vmem %s85_s21, 2048  ;;  %p3516_p12 = scmp.lt.s32.totalorder %s85_s21, %s85_s21 }
  0x2a   :  { %p3512_p11 = scmp.ne.s32.totalorder %s85_s21, %s3511_s22  ;;  %p3517_p13 = scmp.lt.s32.totalorder %s3511_s22, %s3511_s22 }
  0x2c   :  { %p3518_p0 = por %p3517_p13, %p3516_p12 }
  0x2e   :  { %p3519_p1 = pnand %p3518_p0, %p3512_p11 }
  0x30   :  { %3522 = shalt.err (!%p3519_p1)
}
  0x31   :  { %s4723_s2 = smov 128   ;;  %s4727_s29 = smov 8  }
  0x32   :  { %90 = dma.hbm_to_vmem [thread:$0]  %s4708_s9, 2048, %s85_s21, [#allocation9], %s4723_s2, %s4723_s2, %s4727_s29  }
  0x33   :  { %s3523_s25 = scalar_lea.hbm %s4710_s11, 6144 }
  0x34   :  { %p3524_p2 = scmp.ne.s32.totalorder %s4710_s11, %s3523_s25  ;;  %p3527_p3 = scmp.lt.u32.totalorder %s3523_s25, %s4710_s11 }
  0x36   :  { %p3529_p4 = pnand %p3527_p3, %p3524_p2 }
  0x38   :  { %3532 = shalt.err (!%p3529_p4)
}
  0x39   :  { %s3533_s4 = scalar_lea.vmem %s109_s23, 6144  ;;  %p3538_p6 = scmp.lt.s32.totalorder %s109_s23, %s109_s23 }
  0x3a   :  { %p3534_p5 = scmp.ne.s32.totalorder %s109_s23, %s3533_s4  ;;  %p3539_p7 = scmp.lt.s32.totalorder %s3533_s4, %s3533_s4 }
  0x3c   :  { %p3540_p8 = por %p3539_p7, %p3538_p6 }
  0x3e   :  { %p3541_p9 = pnand %p3540_p8, %p3534_p5 }
  0x40   :  { %3544 = shalt.err (!%p3541_p9)
}
  0x41   :  { %s4725_s9 = smov 384   ;;  %s4726_s21 = smov 24  }
  0x42   :  { %114 = dma.hbm_to_vmem [thread:$0]  %s4710_s11, 6144, %s109_s23, [#allocation12], %s4725_s9, %s4725_s9, %s4726_s21  }
  0x43   :  { %s3742_s0 = smov [#allocation14]   ;;  %s3545_s3 = scalar_lea.hbm %s4714_s15, 4096 }
  0x44   :  { %s136_s1 = sshll.u32 %s3742_s0, 4  ;;  %p3546_p10 = scmp.ne.s32.totalorder %s4714_s15, %s3545_s3  ;;  %s137_s1 = int_to_ptr.vmem [resolvable:$true] %s136_s1 }
  0x45   :  { %p3549_p11 = scmp.lt.u32.totalorder %s3545_s3, %s4714_s15 }
  0x47   :  { %p3551_p12 = pnand %p3549_p11, %p3546_p10 }
  0x49   :  { %3554 = shalt.err (!%p3551_p12)
}
  0x4a   :  { %s3555_s2 = scalar_lea.vmem %s137_s1, 4096  ;;  %p3560_p0 = scmp.lt.s32.totalorder %s137_s1, %s137_s1 }
  0x4b   :  { %p3556_p13 = scmp.ne.s32.totalorder %s137_s1, %s3555_s2  ;;  %p3561_p1 = scmp.lt.s32.totalorder %s3555_s2, %s3555_s2 }
  0x4d   :  { %p3562_p2 = por %p3561_p1, %p3560_p0 }
  0x4f   :  { %p3563_p3 = pnand %p3562_p2, %p3556_p13 }
  0x51   :  { %3566 = shalt.err (!%p3563_p3)
}
  0x52   :  { %s3743_s11 = smov 256   ;;  %s3744_s23 = smov 16  }
  0x53   :  { %142 = dma.hbm_to_vmem [thread:$0]  %s4714_s15, 4096, %s137_s1, [#allocation15], %s3743_s11, %s3743_s11, %s3744_s23  }
  0x54   :  { %s3745_s0 = smov [#allocation2]   ;;  %s3746_s25 = smov [#allocation7]  }
  0x55   :  { %s38_s24 = sshll.u32 %s3745_s0, 4  ;;  %s72_s26 = sshll.u32 %s3746_s25, 4  ;;  %s39_s24 = int_to_ptr.vmem [resolvable:$true] %s38_s24  ;;  %s3914_s26 = int_to_ptr.vmem [resolvable:$true] %s72_s26 }
  0x56   :  { %s4735_s28 = sld [smem:[#allocation27_spill]] }
  0x5c   :  { %s3567_s2 = scalar_lea.hbm %s4735_s28, 4096 }
  0x5d   :  { %p3568_p4 = scmp.ne.s32.totalorder %s4735_s28, %s3567_s2  ;;  %p3571_p5 = scmp.lt.u32.totalorder %s3567_s2, %s4735_s28 }
  0x5f   :  { %p3573_p6 = pnand %p3571_p5, %p3568_p4 }
  0x61   :  { %3576 = shalt.err (!%p3573_p6)
}
  0x62   :  { %s3577_s15 = scalar_lea.vmem %s39_s24, 4096  ;;  %p3582_p8 = scmp.lt.s32.totalorder %s39_s24, %s39_s24 }
  0x63   :  { %p3578_p7 = scmp.ne.s32.totalorder %s39_s24, %s3577_s15  ;;  %p3583_p9 = scmp.lt.s32.totalorder %s3577_s15, %s3577_s15 }
  0x65   :  { %p3584_p10 = por %p3583_p9, %p3582_p8 }
  0x67   :  { %p3585_p11 = pnand %p3584_p10, %p3578_p7 }
  0x69   :  { %3588 = shalt.err (!%p3585_p11)
}
  0x6a   :  { %s4736_s1 = smov 8   ;;  %s4737_s11 = smov 128  }
  0x6b   :  { %44 = dma.hbm_to_vmem [thread:$0]  %s4735_s28, 4096, %s39_s24, [#allocation3], %s4737_s11, %s4737_s11, %s4736_s1  }
  0x6c   :  { %s3589_s29 = scalar_lea.hbm %s4707_s8, 2048 }
  0x6d   :  { %p3590_p12 = scmp.ne.s32.totalorder %s4707_s8, %s3589_s29  ;;  %p3593_p13 = scmp.lt.u32.totalorder %s3589_s29, %s4707_s8 }
  0x6f   :  { %p3595_p0 = pnand %p3593_p13, %p3590_p12 }
  0x71   :  { %3598 = shalt.err (!%p3595_p0)
}
  0x72   :  { %s3599_s27 = scalar_lea.vmem %s3914_s26, 2048  ;;  %p3604_p2 = scmp.lt.s32.totalorder %s3914_s26, %s3914_s26 }
  0x73   :  { %p3600_p1 = scmp.ne.s32.totalorder %s3914_s26, %s3599_s27  ;;  %p3605_p3 = scmp.lt.s32.totalorder %s3599_s27, %s3599_s27 }
  0x75   :  { %p3606_p4 = por %p3605_p3, %p3604_p2 }
  0x77   :  { %p3607_p5 = pnand %p3606_p4, %p3600_p1 }
  0x79   :  { %3610 = shalt.err (!%p3607_p5)
}
  0x7a   :  { %78 = dma.hbm_to_vmem [thread:$0]  %s4707_s8, 2048, %s3914_s26, [#allocation6], %s4737_s11, %s4737_s11, %s4736_s1  }
  0x7b   :  { %s3747_s2 = smov [#allocation10]   ;;  %s3748_s15 = smov [#allocation13]  }
  0x7c   :  { %s96_s4 = sshll.u32 %s3747_s2, 4  ;;  %s120_s23 = sshll.u32 %s3748_s15, 4  ;;  %s97_s4 = int_to_ptr.vmem [resolvable:$true] %s96_s4  ;;  %s3951_s23 = int_to_ptr.vmem [resolvable:$true] %s120_s23 }
  0x7d   :  { %s3611_s30 = scalar_lea.hbm %s4709_s10, 2048 }
  0x7e   :  { %p3612_p6 = scmp.ne.s32.totalorder %s4709_s10, %s3611_s30  ;;  %p3615_p7 = scmp.lt.u32.totalorder %s3611_s30, %s4709_s10 }
  0x80   :  { %p3617_p8 = pnand %p3615_p7, %p3612_p6 }
  0x82   :  { %3620 = shalt.err (!%p3617_p8)
}
  0x83   :  { %s3621_s8 = scalar_lea.vmem %s97_s4, 2048  ;;  %p3626_p10 = scmp.lt.s32.totalorder %s97_s4, %s97_s4 }
  0x84   :  { %p3622_p9 = scmp.ne.s32.totalorder %s97_s4, %s3621_s8  ;;  %p3627_p11 = scmp.lt.s32.totalorder %s3621_s8, %s3621_s8 }
  0x86   :  { %p3628_p12 = por %p3627_p11, %p3626_p10 }
  0x88   :  { %p3629_p13 = pnand %p3628_p12, %p3622_p9 }
  0x8a   :  { %3632 = shalt.err (!%p3629_p13)
}
  0x8b   :  { %102 = dma.hbm_to_vmem [thread:$0]  %s4709_s10, 2048, %s97_s4, [#allocation9], %s4737_s11, %s4737_s11, %s4736_s1  }
  0x8c   :  { %s3633_s28 = scalar_lea.hbm %s4711_s12, 6144 }
  0x8d   :  { %p3634_p0 = scmp.ne.s32.totalorder %s4711_s12, %s3633_s28  ;;  %p3637_p1 = scmp.lt.u32.totalorder %s3633_s28, %s4711_s12 }
  0x8f   :  { %p3639_p2 = pnand %p3637_p1, %p3634_p0 }
  0x91   :  { %3642 = shalt.err (!%p3639_p2)
}
  0x92   :  { %s3643_s30 = scalar_lea.vmem %s3951_s23, 6144  ;;  %p3648_p4 = scmp.lt.s32.totalorder %s3951_s23, %s3951_s23 }
  0x93   :  { %p3644_p3 = scmp.ne.s32.totalorder %s3951_s23, %s3643_s30  ;;  %p3649_p5 = scmp.lt.s32.totalorder %s3643_s30, %s3643_s30 }
  0x95   :  { %p3650_p6 = por %p3649_p5, %p3648_p4 }
  0x97   :  { %p3651_p7 = pnand %p3650_p6, %p3644_p3 }
  0x99   :  { %3654 = shalt.err (!%p3651_p7)
}
  0x9a   :  { %s4738_s10 = smov 24   ;;  %s4739_s4 = smov 384  }
  0x9b   :  { %126 = dma.hbm_to_vmem [thread:$0]  %s4711_s12, 6144, %s3951_s23, [#allocation12], %s4739_s4, %s4739_s4, %s4738_s10  }
  0x9c   :  { %s3749_s0 = smov [#allocation16]   ;;  %s3655_s3 = scalar_lea.hbm %s4716_s17, 4096 }
  0x9d   :  { %s150_s25 = sshll.u32 %s3749_s0, 4  ;;  %p3656_p8 = scmp.ne.s32.totalorder %s4716_s17, %s3655_s3  ;;  %s151_s25 = int_to_ptr.vmem [resolvable:$true] %s150_s25 }
  0x9e   :  { %p3659_p9 = scmp.lt.u32.totalorder %s3655_s3, %s4716_s17 }
  0xa0   :  { %p3661_p10 = pnand %p3659_p9, %p3656_p8 }
  0xa2   :  { %3664 = shalt.err (!%p3661_p10)
}
  0xa3   :  { %s3665_s15 = scalar_lea.vmem %s151_s25, 4096  ;;  %p3670_p12 = scmp.lt.s32.totalorder %s151_s25, %s151_s25 }
  0xa4   :  { %p3666_p11 = scmp.ne.s32.totalorder %s151_s25, %s3665_s15  ;;  %p3671_p13 = scmp.lt.s32.totalorder %s3665_s15, %s3665_s15 }
  0xa6   :  { %p3672_p0 = por %p3671_p13, %p3670_p12 }
  0xa8   :  { %p3673_p1 = pnand %p3672_p0, %p3666_p11 }
  0xaa   :  { %3676 = shalt.err (!%p3673_p1)
}
  0xab   :  { %156 = dma.hbm_to_vmem [thread:$0]  %s4716_s17, 4096, %s151_s25, [#allocation15], %s4737_s11, %s4737_s11, %s4736_s1  }
  0xac   :  { %3721 = dma.done.wait [#allocation3], 4096  }
  0xad   :  { %3722 = vsyncadd [#allocation3], 4294963200 }
  0xae   :  { %3723 = dma.done.wait [#allocation6], 2176  }
  0xaf   :  { %3724 = vsyncadd [#allocation6], 4294965120 }
  0xb0   :  { %3725 = dma.done.wait [#allocation9], 4096  }
  0xb1   :  { %3726 = vsyncadd [#allocation9], 4294963200 }
  0xb2   :  { %3727 = dma.done.wait [#allocation12], 12288  }
  0xb3   :  { %3728 = vsyncadd [#allocation12], 4294955008 }
  0xb4   :  { %3729 = dma.done.wait [#allocation15], 8192  }
  0xb5   :  { %3730 = vsyncadd [#allocation15], 4294959104  ;;  %v4003_v0 = vld [vmem:[#allocation2 + $0x80] sm:$0xff]  ;;  %v4005_v1 = vld [vmem:[#allocation2 + $0x88] sm:$0xff]  ;;  %s4740_s11 = sld [smem:[#allocation29_spill]]  ;;  %s4741_s30 = sld [smem:[#allocation30_spill]] }
  0xb6   :  { %252 = vadd.xlane.f32.xlu0 %v4003_v0  ;;  %254 = vadd.xlane.f32.xlu1 %v4005_v1  ;;  %v4009_v2 = vld [vmem:[#allocation2] sm:$0xff]  ;;  %v4011_v3 = vld [vmem:[#allocation2 + $0x8] sm:$0xff]  ;;  %v4015_v4 = vld [vmem:[#allocation2 + $0x90] sm:$0xff]  ;;  %s4742_s29 = sld [smem:[#allocation31_spill]]  ;;  %vm3751_vm0 = vmmov 0   ;;  %s3753_s23 = smov [#allocation17]  }
  0xb7   :  { %v4017_v5 = vld [vmem:[#allocation2 + $0x10] sm:$0xff]  ;;  %v4021_v6 = vld [vmem:[#allocation2 + $0x98] sm:$0xff]  ;;  %v4027_v8 = vld [vmem:[#allocation2 + $0xa0] sm:$0xff]  ;;  %s2316_s17 = sshll.u32 %s3753_s23, 4  ;;  %s2317_s17 = int_to_ptr.vmem [resolvable:$true] %s2316_s17 }
  0xb8   :  { %v4023_v7 = vld [vmem:[#allocation2 + $0x18] sm:$0xff]  ;;  %v4029_v9 = vld [vmem:[#allocation2 + $0x20] sm:$0xff]  ;;  %v4033_v10 = vld [vmem:[#allocation2 + $0xa8] sm:$0xff]  ;;  %s3677_s1 = scalar_lea.vmem %s2317_s17, 128  ;;  %p3682_p3 = scmp.lt.s32.totalorder %s2317_s17, %s2317_s17 }
  0xb9   :  { %v4035_v11 = vld [vmem:[#allocation2 + $0x28] sm:$0xff]  ;;  %v4039_v12 = vld [vmem:[#allocation2 + $0xb0] sm:$0xff]  ;;  %v4045_v14 = vld [vmem:[#allocation2 + $0xb8] sm:$0xff]  ;;  %p3678_p2 = scmp.ne.s32.totalorder %s2317_s17, %s3677_s1  ;;  %p3683_p4 = scmp.lt.s32.totalorder %s3677_s1, %s3677_s1 }
  0xba   :  { %220 = vadd.xlane.f32.xlu0 %v4009_v2  ;;  %222 = vadd.xlane.f32.xlu1 %v4011_v3  ;;  %v4041_v13 = vld [vmem:[#allocation2 + $0x30] sm:$0xff]  ;;  %v4047_v15 = vld [vmem:[#allocation2 + $0x38] sm:$0xff]  ;;  %v4051_v16 = vld [vmem:[#allocation2 + $0xc0] sm:$0xff] }
  0xbb   :  { %v4053_v17 = vld [vmem:[#allocation2 + $0x40] sm:$0xff]  ;;  %v4057_v18 = vld [vmem:[#allocation2 + $0xc8] sm:$0xff]  ;;  %v4063_v20 = vld [vmem:[#allocation2 + $0xd0] sm:$0xff]  ;;  %p3684_p5 = por %p3683_p4, %p3682_p3 }
  0xbc   :  { %v4059_v19 = vld [vmem:[#allocation2 + $0x48] sm:$0xff]  ;;  %v4065_v21 = vld [vmem:[#allocation2 + $0x50] sm:$0xff]  ;;  %v4069_v22 = vld [vmem:[#allocation2 + $0xd8] sm:$0xff] }
  0xbd   :  { %v4071_v23 = vld [vmem:[#allocation2 + $0x58] sm:$0xff]  ;;  %v4075_v24 = vld [vmem:[#allocation2 + $0xe0] sm:$0xff]  ;;  %v4081_v26 = vld [vmem:[#allocation2 + $0xe8] sm:$0xff]  ;;  %p3685_p6 = pnand %p3684_p5, %p3678_p2 }
  0xbe   :  { %256 = vadd.xlane.f32.xlu0 %v4015_v4  ;;  %224 = vadd.xlane.f32.xlu1 %v4017_v5  ;;  %v4077_v25 = vld [vmem:[#allocation2 + $0x60] sm:$0xff]  ;;  %v4083_v27 = vld [vmem:[#allocation2 + $0x68] sm:$0xff]  ;;  %v4087_v28 = vld [vmem:[#allocation2 + $0xf0] sm:$0xff] }
  0xbf   :  { %v4089_v29 = vld [vmem:[#allocation2 + $0x70] sm:$0xff]  ;;  %v4093_v30 = vld [vmem:[#allocation2 + $0xf8] sm:$0xff]  ;;  %v4099_v32 = vld [vmem:[#allocation5] sm:$0xff] }
  0xc0   :  { %v4095_v31 = vld [vmem:[#allocation2 + $0x78] sm:$0xff]  ;;  %v649_v33 = vld [vmem:[#allocation8] sm:$0xff]  ;;  %v650_v34 = vld [vmem:[#allocation8 + $0x8] sm:$0xff] }
  0xc1   :  { %v651_v35 = vld [vmem:[#allocation8 + $0x10] sm:$0xff]  ;;  %v2952_v36 = vpack.c.bf16 %v650_v34, %v649_v33  ;;  %v652_v37 = vld [vmem:[#allocation8 + $0x18] sm:$0xff] }
  0xc2   :  { %258 = vadd.xlane.f32.xlu0 %v4021_v6  ;;  %226 = vadd.xlane.f32.xlu1 %v4023_v7  ;;  %v2956_v38 = vpack.c.bf16 %v652_v37, %v651_v35 }
  0xc3   :  { %3336 = vmatprep.subr.bf16.mxu1 %v2952_v36  ;;  %2953 = vmatprep.subr.bf16.mxu0 %v2952_v36 }
  0xc4   :  { %3344 = vmatpush3.bf16.msra.mxu1 %v2952_v36  ;;  %2955 = vmatpush3.bf16.msra.mxu0 %v2952_v36 }
  0xc5   :  { %3337 = vmatprep.subr.bf16.mxu1 %v2956_v38  ;;  %2957 = vmatprep.subr.bf16.mxu0 %v2956_v38 }
  0xc6   :  { %260 = vadd.xlane.f32.xlu0 %v4027_v8  ;;  %228 = vadd.xlane.f32.xlu1 %v4029_v9 }
  0xc8   :  { %3345 = vmatpush3.bf16.msra.mxu1 %v2956_v38  ;;  %2959 = vmatpush3.bf16.msra.mxu0 %v2956_v38  ;;  %v653_v38 = vld [vmem:[#allocation8 + $0x20] sm:$0xff] }
  0xca   :  { %262 = vadd.xlane.f32.xlu0 %v4033_v10  ;;  %230 = vadd.xlane.f32.xlu1 %v4035_v11 }
  0xce   :  { %264 = vadd.xlane.f32.xlu0 %v4039_v12  ;;  %232 = vadd.xlane.f32.xlu1 %v4041_v13 }
  0xd2   :  { %266 = vadd.xlane.f32.xlu0 %v4045_v14  ;;  %234 = vadd.xlane.f32.xlu1 %v4047_v15 }
  0xd6   :  { %268 = vadd.xlane.f32.xlu0 %v4051_v16  ;;  %236 = vadd.xlane.f32.xlu1 %v4053_v17 }
  0xda   :  { %270 = vadd.xlane.f32.xlu0 %v4057_v18  ;;  %238 = vadd.xlane.f32.xlu1 %v4059_v19 }
  0xde   :  { %272 = vadd.xlane.f32.xlu0 %v4063_v20  ;;  %240 = vadd.xlane.f32.xlu1 %v4065_v21 }
  0xe2   :  { %274 = vadd.xlane.f32.xlu0 %v4069_v22  ;;  %242 = vadd.xlane.f32.xlu1 %v4071_v23 }
  0xe6   :  { %276 = vadd.xlane.f32.xlu0 %v4075_v24  ;;  %244 = vadd.xlane.f32.xlu1 %v4077_v25 }
  0xea   :  { %278 = vadd.xlane.f32.xlu0 %v4081_v26  ;;  %246 = vadd.xlane.f32.xlu1 %v4083_v27 }
  0xee   :  { %280 = vadd.xlane.f32.xlu0 %v4087_v28  ;;  %248 = vadd.xlane.f32.xlu1 %v4089_v29 }
  0xf2   :  { %282 = vadd.xlane.f32.xlu0 %v4093_v30  ;;  %250 = vadd.xlane.f32.xlu1 %v4095_v31 }
  0xf6   :  { %1150 = vadd.xlane.f32.xlu0 %v4099_v32 }
 0x143   :  { %v253_v39 = vpop.xlane.xlu0 %252  ;;  %v255_v40 = vpop.xlane.xlu1 %254 }
 0x144   :  { %v301_v41 = vmul.f32 0.0078125, %v253_v39  ;;  %v302_v42 = vmul.f32 0.0078125, %v255_v40  ;;  %v654_v39 = vld [vmem:[#allocation8 + $0x28] sm:$0xff] }
 0x146   :  { %v4103_v43 = vsub.f32 %v4003_v0, %v301_v41  ;;  %v4106_v44 = vsub.f32 %v4005_v1, %v302_v42  ;;  %v2960_v42 = vpack.c.bf16 %v654_v39, %v653_v38  ;;  %v659_v38 = vld [vmem:[#allocation8 + $0x50] sm:$0xff]  ;;  %v660_v39 = vld [vmem:[#allocation8 + $0x58] sm:$0xff] }
 0x147   :  { %v221_v45 = vpop.xlane.xlu0 %220  ;;  %v223_v46 = vpop.xlane.xlu1 %222 }
 0x148   :  { %v285_v47 = vmul.f32 0.0078125, %v221_v45  ;;  %v365_v48 = vmul.f32 %v4103_v43, %v4103_v43  ;;  %v286_v49 = vmul.f32 0.0078125, %v223_v46  ;;  %v366_v52 = vmul.f32 %v4106_v44, %v4106_v44  ;;  %3338 = vmatprep.subr.bf16.mxu1 %v2960_v42  ;;  %2961 = vmatprep.subr.bf16.mxu0 %v2960_v42 }
 0x149   :  { %3346 = vmatpush3.bf16.msra.mxu1 %v2960_v42  ;;  %2963 = vmatpush3.bf16.msra.mxu0 %v2960_v42  ;;  %v2972_v42 = vpack.c.bf16 %v660_v39, %v659_v38 }
 0x14a   :  { %v4111_v50 = vsub.f32 %v4009_v2, %v285_v47  ;;  %413 = vadd.xlane.f32.xlu1 %v365_v48  ;;  %v4114_v51 = vsub.f32 %v4011_v3, %v286_v49 }
 0x14b   :  { %v257_v53 = vpop.xlane.xlu0 %256  ;;  %v225_v54 = vpop.xlane.xlu1 %224 }
 0x14c   :  { %v303_v55 = vmul.f32 0.0078125, %v257_v53  ;;  %v349_v56 = vmul.f32 %v4111_v50, %v4111_v50  ;;  %v287_v57 = vmul.f32 0.0078125, %v225_v54  ;;  %v350_v60 = vmul.f32 %v4114_v51, %v4114_v51  ;;  %v655_v53 = vld [vmem:[#allocation8 + $0x30] sm:$0xff]  ;;  %v656_v54 = vld [vmem:[#allocation8 + $0x38] sm:$0xff] }
 0x14e   :  { %v4121_v58 = vsub.f32 %v4015_v4, %v303_v55  ;;  %415 = vadd.xlane.f32.xlu1 %v366_v52  ;;  %381 = vadd.xlane.f32.xlu0 %v349_v56  ;;  %v4124_v59 = vsub.f32 %v4017_v5, %v287_v57  ;;  %v2964_v57 = vpack.c.bf16 %v656_v54, %v655_v53 }
 0x14f   :  { %v259_v61 = vpop.xlane.xlu0 %258  ;;  %v227_v62 = vpop.xlane.xlu1 %226 }
 0x150   :  { %v304_v63 = vmul.f32 0.0078125, %v259_v61  ;;  %v367_v0 = vmul.f32 %v4121_v58, %v4121_v58  ;;  %v288_v1 = vmul.f32 0.0078125, %v227_v62  ;;  %v351_v4 = vmul.f32 %v4124_v59, %v4124_v59  ;;  %3339 = vmatprep.subr.bf16.mxu1 %v2964_v57  ;;  %2965 = vmatprep.subr.bf16.mxu0 %v2964_v57 }
 0x151   :  { %3347 = vmatpush3.bf16.msra.mxu1 %v2964_v57  ;;  %2967 = vmatpush3.bf16.msra.mxu0 %v2964_v57 }
 0x152   :  { %v4131_v2 = vsub.f32 %v4021_v6, %v304_v63  ;;  %383 = vadd.xlane.f32.xlu0 %v350_v60  ;;  %417 = vadd.xlane.f32.xlu1 %v367_v0  ;;  %v4134_v3 = vsub.f32 %v4023_v7, %v288_v1  ;;  %v657_v0 = vld [vmem:[#allocation8 + $0x40] sm:$0xff]  ;;  %v658_v1 = vld [vmem:[#allocation8 + $0x48] sm:$0xff] }
 0x153   :  { %v261_v5 = vpop.xlane.xlu0 %260  ;;  %v229_v33 = vpop.xlane.xlu1 %228 }
 0x154   :  { %v305_v34 = vmul.f32 0.0078125, %v261_v5  ;;  %v368_v35 = vmul.f32 %v4131_v2, %v4131_v2  ;;  %v289_v36 = vmul.f32 0.0078125, %v229_v33  ;;  %v352_v7 = vmul.f32 %v4134_v3, %v4134_v3 }
 0x155   :  { %v2968_v33 = vpack.c.bf16 %v658_v1, %v657_v0 }
 0x156   :  { %v4141_v37 = vsub.f32 %v4027_v8, %v305_v34  ;;  %385 = vadd.xlane.f32.xlu0 %v351_v4  ;;  %419 = vadd.xlane.f32.xlu1 %v368_v35  ;;  %v4144_v6 = vsub.f32 %v4029_v9, %v289_v36 }
 0x157   :  { %v263_v40 = vpop.xlane.xlu0 %262  ;;  %v231_v41 = vpop.xlane.xlu1 %230  ;;  %3340 = vmatprep.subr.bf16.mxu1 %v2968_v33  ;;  %2969 = vmatprep.subr.bf16.mxu0 %v2968_v33 }
 0x158   :  { %v306_v45 = vmul.f32 0.0078125, %v263_v40  ;;  %v369_v46 = vmul.f32 %v4141_v37, %v4141_v37  ;;  %v290_v47 = vmul.f32 0.0078125, %v231_v41  ;;  %v353_v48 = vmul.f32 %v4144_v6, %v4144_v6  ;;  %3348 = vmatpush3.bf16.msra.mxu1 %v2968_v33  ;;  %2971 = vmatpush3.bf16.msra.mxu0 %v2968_v33 }
 0x159   :  { %3341 = vmatprep.subr.bf16.mxu1 %v2972_v42  ;;  %2973 = vmatprep.subr.bf16.mxu0 %v2972_v42 }
 0x15a   :  { %v4151_v8 = vsub.f32 %v4033_v10, %v306_v45  ;;  %387 = vadd.xlane.f32.xlu0 %v352_v7  ;;  %421 = vadd.xlane.f32.xlu1 %v369_v46  ;;  %v4154_v9 = vsub.f32 %v4035_v11, %v290_v47 }
 0x15b   :  { %v265_v49 = vpop.xlane.xlu0 %264  ;;  %v233_v52 = vpop.xlane.xlu1 %232 }
 0x15c   :  { %v307_v55 = vmul.f32 0.0078125, %v265_v49  ;;  %v370_v56 = vmul.f32 %v4151_v8, %v4151_v8  ;;  %v291_v10 = vmul.f32 0.0078125, %v233_v52  ;;  %v354_v61 = vmul.f32 %v4154_v9, %v4154_v9  ;;  %v661_v49 = vld [vmem:[#allocation8 + $0x60] sm:$0xff]  ;;  %v662_v52 = vld [vmem:[#allocation8 + $0x68] sm:$0xff]  ;;  %3349 = vmatpush3.bf16.msra.mxu1 %v2972_v42  ;;  %2975 = vmatpush3.bf16.msra.mxu0 %v2972_v42 }
 0x15e   :  { %v4161_v60 = vsub.f32 %v4039_v12, %v307_v55  ;;  %389 = vadd.xlane.f32.xlu0 %v353_v48  ;;  %423 = vadd.xlane.f32.xlu1 %v370_v56  ;;  %v4164_v11 = vsub.f32 %v4041_v13, %v291_v10  ;;  %v2976_v55 = vpack.c.bf16 %v662_v52, %v661_v49 }
 0x15f   :  { %v267_v62 = vpop.xlane.xlu0 %266  ;;  %v235_v63 = vpop.xlane.xlu1 %234 }
 0x160   :  { %v308_v4 = vmul.f32 0.0078125, %v267_v62  ;;  %v371_v5 = vmul.f32 %v4161_v60, %v4161_v60  ;;  %v292_v12 = vmul.f32 0.0078125, %v235_v63  ;;  %v355_v35 = vmul.f32 %v4164_v11, %v4164_v11  ;;  %3342 = vmatprep.subr.bf16.mxu1 %v2976_v55  ;;  %2977 = vmatprep.subr.bf16.mxu0 %v2976_v55  ;;  %v663_v62 = vld [vmem:[#allocation8 + $0x70] sm:$0xff]  ;;  %v664_v63 = vld [vmem:[#allocation8 + $0x78] sm:$0xff] }
 0x161   :  { %3350 = vmatpush3.bf16.msra.mxu1 %v2976_v55  ;;  %2979 = vmatpush3.bf16.msra.mxu0 %v2976_v55 }
 0x162   :  { %v4171_v13 = vsub.f32 %v4045_v14, %v308_v4  ;;  %391 = vadd.xlane.f32.xlu0 %v354_v61  ;;  %425 = vadd.xlane.f32.xlu1 %v371_v5  ;;  %v4174_v34 = vsub.f32 %v4047_v15, %v292_v12  ;;  %v2980_v4 = vpack.c.bf16 %v664_v63, %v663_v62 }
 0x163   :  { %v269_v36 = vpop.xlane.xlu0 %268  ;;  %v237_v7 = vpop.xlane.xlu1 %236 }
 0x164   :  { %v309_v40 = vmul.f32 0.0078125, %v269_v36  ;;  %v372_v41 = vmul.f32 %v4171_v13, %v4171_v13  ;;  %v293_v14 = vmul.f32 0.0078125, %v237_v7  ;;  %v356_v46 = vmul.f32 %v4174_v34, %v4174_v34  ;;  %3343 = vmatprep.subr.bf16.mxu1 %v2980_v4  ;;  %2981 = vmatprep.subr.bf16.mxu0 %v2980_v4 }
 0x165   :  { %3351 = vmatpush3.bf16.msra.mxu1 %v2980_v4  ;;  %2983 = vmatpush3.bf16.msra.mxu0 %v2980_v4 }
 0x166   :  { %v4181_v15 = vsub.f32 %v4051_v16, %v309_v40  ;;  %393 = vadd.xlane.f32.xlu0 %v355_v35  ;;  %427 = vadd.xlane.f32.xlu1 %v372_v41  ;;  %v4184_v45 = vsub.f32 %v4053_v17, %v293_v14 }
 0x167   :  { %v271_v47 = vpop.xlane.xlu0 %270  ;;  %v239_v48 = vpop.xlane.xlu1 %238 }
 0x168   :  { %v310_v53 = vmul.f32 0.0078125, %v271_v47  ;;  %v373_v54 = vmul.f32 %v4181_v15, %v4181_v15  ;;  %v294_v16 = vmul.f32 0.0078125, %v239_v48  ;;  %v357_v10 = vmul.f32 %v4184_v45, %v4184_v45 }
 0x16a   :  { %v4191_v17 = vsub.f32 %v4057_v18, %v310_v53  ;;  %395 = vadd.xlane.f32.xlu0 %v356_v46  ;;  %429 = vadd.xlane.f32.xlu1 %v373_v54  ;;  %v4194_v56 = vsub.f32 %v4059_v19, %v294_v16 }
 0x16b   :  { %v273_v57 = vpop.xlane.xlu0 %272  ;;  %v241_v61 = vpop.xlane.xlu1 %240 }
 0x16c   :  { %v311_v0 = vmul.f32 0.0078125, %v273_v57  ;;  %v374_v1 = vmul.f32 %v4191_v17, %v4191_v17  ;;  %v295_v18 = vmul.f32 0.0078125, %v241_v61  ;;  %v358_v12 = vmul.f32 %v4194_v56, %v4194_v56 }
 0x16e   :  { %v4201_v19 = vsub.f32 %v4063_v20, %v311_v0  ;;  %397 = vadd.xlane.f32.xlu0 %v357_v10  ;;  %431 = vadd.xlane.f32.xlu1 %v374_v1  ;;  %v4204_v5 = vsub.f32 %v4065_v21, %v295_v18 }
 0x16f   :  { %v275_v33 = vpop.xlane.xlu0 %274  ;;  %v243_v35 = vpop.xlane.xlu1 %242 }
 0x170   :  { %v312_v36 = vmul.f32 0.0078125, %v275_v33  ;;  %v375_v7 = vmul.f32 %v4201_v19, %v4201_v19  ;;  %v296_v38 = vmul.f32 0.0078125, %v243_v35  ;;  %v359_v39 = vmul.f32 %v4204_v5, %v4204_v5 }
 0x172   :  { %v4211_v20 = vsub.f32 %v4069_v22, %v312_v36  ;;  %399 = vadd.xlane.f32.xlu0 %v358_v12  ;;  %433 = vadd.xlane.f32.xlu1 %v375_v7  ;;  %v4214_v21 = vsub.f32 %v4071_v23, %v296_v38 }
 0x173   :  { %v277_v40 = vpop.xlane.xlu0 %276  ;;  %v245_v41 = vpop.xlane.xlu1 %244 }
 0x174   :  { %v313_v14 = vmul.f32 0.0078125, %v277_v40  ;;  %v376_v42 = vmul.f32 %v4211_v20, %v4211_v20  ;;  %v297_v46 = vmul.f32 0.0078125, %v245_v41  ;;  %v360_v23 = vmul.f32 %v4214_v21, %v4214_v21  ;;  %v891_v40 = vld [vmem:[#allocation10 + $0x8] sm:$0xff] }
 0x176   :  { %v4221_v47 = vsub.f32 %v4075_v24, %v313_v14  ;;  %401 = vadd.xlane.f32.xlu0 %v359_v39  ;;  %435 = vadd.xlane.f32.xlu1 %v376_v42  ;;  %v4224_v22 = vsub.f32 %v4077_v25, %v297_v46  ;;  %v890_v39 = vld [vmem:[#allocation10] sm:$0xff]  ;;  %v3750_v14 = vmov 0.0|0.0  }
 0x177   :  { %v279_v48 = vpop.xlane.xlu0 %278  ;;  %v247_v49 = vpop.xlane.xlu1 %246  ;;  %v4267_v41 = vpack.c.bf16 %v891_v40, %v890_v39  ;;  %3016 = vmatprep.subr.bf16.mxu0 %v3750_v14  ;;  %v4280_v40 = vld [vmem:[%s4741_s30] ss:$0 sm:$0xff] }
 0x178   :  { %v314_v52 = vmul.f32 0.0078125, %v279_v48  ;;  %v377_v53 = vmul.f32 %v4221_v47, %v4221_v47  ;;  %v298_v54 = vmul.f32 0.0078125, %v247_v49  ;;  %v361_v25 = vmul.f32 %v4224_v22, %v4224_v22 }
 0x179   :  { %2985 = vmatprep.subr.bf16.mxu1 %v4267_v41 }
 0x17a   :  { %v4231_v16 = vsub.f32 %v4081_v26, %v314_v52  ;;  %403 = vadd.xlane.f32.xlu0 %v360_v23  ;;  %437 = vadd.xlane.f32.xlu1 %v377_v53  ;;  %v4234_v24 = vsub.f32 %v4083_v27, %v298_v54 }
 0x17b   :  { %v281_v55 = vpop.xlane.xlu0 %280  ;;  %v249_v10 = vpop.xlane.xlu1 %248 }
 0x17c   :  { %v315_v57 = vmul.f32 0.0078125, %v281_v55  ;;  %v378_v61 = vmul.f32 %v4231_v16, %v4231_v16  ;;  %v299_v62 = vmul.f32 0.0078125, %v249_v10  ;;  %v362_v27 = vmul.f32 %v4234_v24, %v4234_v24 }
 0x17e   :  { %v4241_v63 = vsub.f32 %v4087_v28, %v315_v57  ;;  %405 = vadd.xlane.f32.xlu0 %v361_v25  ;;  %439 = vadd.xlane.f32.xlu1 %v378_v61  ;;  %v4244_v26 = vsub.f32 %v4089_v29, %v299_v62 }
 0x17f   :  { %v283_v0 = vpop.xlane.xlu0 %282  ;;  %v251_v1 = vpop.xlane.xlu1 %250 }
 0x180   :  { %v316_v18 = vmul.f32 0.0078125, %v283_v0  ;;  %v379_v4 = vmul.f32 %v4241_v63, %v4241_v63  ;;  %v300_v12 = vmul.f32 0.0078125, %v251_v1  ;;  %v363_v29 = vmul.f32 %v4244_v26, %v4244_v26 }
 0x182   :  { %v4251_v33 = vsub.f32 %v4093_v30, %v316_v18  ;;  %407 = vadd.xlane.f32.xlu0 %v362_v27  ;;  %441 = vadd.xlane.f32.xlu1 %v379_v4  ;;  %v4254_v28 = vsub.f32 %v4095_v31, %v300_v12 }
 0x183   :  { %v1151_v35 = vpop.xlane.xlu0 %1150 }
 0x184   :  { %v1152_v36 = vmul.f32 0.0078125, %v1151_v35  ;;  %v380_v7 = vmul.f32 %v4251_v33, %v4251_v33  ;;  %v364_v30 = vmul.f32 %v4254_v28, %v4254_v28  ;;  %v4274_v35 = vld [vmem:[%s4740_s11] ss:$0 sm:$0xff] }
 0x186   :  { %v4261_v38 = vsub.f32 %v4099_v32, %v1152_v36  ;;  %409 = vadd.xlane.f32.xlu0 %v363_v29  ;;  %443 = vadd.xlane.f32.xlu1 %v380_v7 }
 0x188   :  { %v1154_v31 = vmul.f32 %v4261_v38, %v4261_v38 }
 0x18a   :  { %411 = vadd.xlane.f32.xlu0 %v364_v30  ;;  %1155 = vadd.xlane.f32.xlu1 %v1154_v31 }
 0x1d7   :  { %v414_v32 = vpop.xlane.xlu1 %413 }
 0x1d8   :  { %v461_v42 = vmul.f32 0.0078125, %v414_v32 }
 0x1da   :  { %v493_v46 = vadd.f32 1e-05, %v461_v42 }
 0x1db   :  { %v416_v23 = vpop.xlane.xlu1 %415  ;;  %v382_v48 = vpop.xlane.xlu0 %381 }
 0x1dc   :  { %3378 = vrsqrt.f32 %v493_v46  ;;  %v462_v49 = vmul.f32 0.0078125, %v416_v23  ;;  %v445_v52 = vmul.f32 0.0078125, %v382_v48 }
 0x1de   :  { %v494_v53 = vadd.f32 1e-05, %v462_v49  ;;  %v477_v54 = vadd.f32 1e-05, %v445_v52 }
 0x1df   :  { %v418_v25 = vpop.xlane.xlu1 %417  ;;  %v384_v55 = vpop.xlane.xlu0 %383 }
 0x1e0   :  { %3380 = vrsqrt.f32 %v494_v53  ;;  %v463_v10 = vmul.f32 0.0078125, %v418_v25  ;;  %v446_v57 = vmul.f32 0.0078125, %v384_v55 }
 0x1e1   :  { %3382 = vrsqrt.f32 %v477_v54 }
 0x1e2   :  { %v495_v61 = vadd.f32 1e-05, %v463_v10  ;;  %v478_v62 = vadd.f32 1e-05, %v446_v57  ;;  %v892_v10 = vld [vmem:[#allocation10 + $0x10] sm:$0xff]  ;;  %v893_v57 = vld [vmem:[#allocation10 + $0x18] sm:$0xff] }
 0x1e3   :  { %v420_v27 = vpop.xlane.xlu1 %419  ;;  %v386_v0 = vpop.xlane.xlu0 %385 }
 0x1e4   :  { %3384 = vrsqrt.f32 %v495_v61  ;;  %v464_v1 = vmul.f32 0.0078125, %v420_v27  ;;  %v447_v18 = vmul.f32 0.0078125, %v386_v0 }
 0x1e5   :  { %3386 = vrsqrt.f32 %v478_v62 }
 0x1e6   :  { %v3379_v4 = vpop.eup %3378  ;;  %v496_v12 = vadd.f32 1e-05, %v464_v1  ;;  %v479_v29 = vadd.f32 1e-05, %v447_v18 }
 0x1e7   :  { %v422_v36 = vpop.xlane.xlu1 %421  ;;  %v388_v7 = vpop.xlane.xlu0 %387  ;;  %v557_v30 = vmul.f32 %v3379_v4, %v4103_v43 }
 0x1e8   :  { %3388 = vrsqrt.f32 %v496_v12  ;;  %v465_v31 = vmul.f32 0.0078125, %v422_v36  ;;  %v448_v39 = vmul.f32 0.0078125, %v388_v7  ;;  %v1133_v36 = vld [vmem:[#allocation7] sm:$0xff]  ;;  %v1134_v7 = vld [vmem:[#allocation7 + $0x8] sm:$0xff] }
 0x1e9   :  { %3390 = vrsqrt.f32 %v479_v29  ;;  %v595_v32 = vmul.f32 %v4274_v35, %v557_v30  ;;  %v2988_v29 = vpack.c.bf16 %v893_v57, %v892_v10 }
 0x1ea   :  { %v3381_v42 = vpop.eup %3380  ;;  %v497_v46 = vadd.f32 1e-05, %v465_v31  ;;  %v480_v23 = vadd.f32 1e-05, %v448_v39 }
 0x1eb   :  { %v3383_v48 = vpop.eup %3382  ;;  %v424_v49 = vpop.xlane.xlu1 %423  ;;  %v4284_v53 = vadd.f32 %v4280_v40, %v595_v32  ;;  %v558_v43 = vmul.f32 %v3381_v42, %v4106_v44  ;;  %v894_v32 = vld [vmem:[#allocation10 + $0x20] sm:$0xff]  ;;  %v895_v42 = vld [vmem:[#allocation10 + $0x28] sm:$0xff] }
 0x1ec   :  { %v390_v52 = vpop.xlane.xlu0 %389  ;;  %3392 = vrsqrt.f32 %v497_v46  ;;  %v466_v54 = vmul.f32 0.0078125, %v424_v49  ;;  %v541_v55 = vmul.f32 %v3383_v48, %v4111_v50  ;;  %v2992_v57 = vpack.c.bf16 %v895_v42, %v894_v32 }
 0x1ed   :  { %v449_v25 = vmul.f32 0.0078125, %v390_v52  ;;  %3394 = vrsqrt.f32 %v480_v23  ;;  %2708 = vmatprep.mubr.f32.mxu1 %v4284_v53  ;;  %v596_v61 = vmul.f32 %v4274_v35, %v558_v43  ;;  %v4303_v52 = vpack.c.bf16 %v1134_v7, %v1133_v36 }
 0x1ee   :  { %v3385_v62 = vpop.eup %3384  ;;  %v498_v27 = vadd.f32 1e-05, %v466_v54  ;;  %v579_v1 = vmul.f32 %v4274_v35, %v541_v55 }
 0x1ef   :  { %v481_v0 = vadd.f32 1e-05, %v449_v25  ;;  %v3387_v18 = vpop.eup %3386  ;;  %v426_v4 = vpop.xlane.xlu1 %425  ;;  %v4292_v12 = vadd.f32 %v4280_v40, %v596_v61  ;;  %v559_v50 = vmul.f32 %v3385_v62, %v4121_v58  ;;  %v1135_v61 = vld [vmem:[#allocation7 + $0x10] sm:$0xff]  ;;  %v1136_v62 = vld [vmem:[#allocation7 + $0x18] sm:$0xff] }
 0x1f0   :  { %v392_v44 = vpop.xlane.xlu0 %391  ;;  %3396 = vrsqrt.f32 %v498_v27  ;;  %v467_v30 = vmul.f32 0.0078125, %v426_v4  ;;  %v4296_v39 = vadd.f32 %v4280_v40, %v579_v1  ;;  %v542_v46 = vmul.f32 %v3387_v18, %v4114_v51  ;;  %v896_v1 = vld [vmem:[#allocation10 + $0x30] sm:$0xff]  ;;  %v897_v18 = vld [vmem:[#allocation10 + $0x38] sm:$0xff] }
 0x1f1   :  { %v450_v31 = vmul.f32 0.0078125, %v392_v44  ;;  %3398 = vrsqrt.f32 %v481_v0  ;;  %2709 = vmatmul.mubr.f32.vlgmr.msra.gmra.mrb[0].mxu1 %v4292_v12  ;;  %v597_v23 = vmul.f32 %v4274_v35, %v559_v50 }
 0x1f2   :  { %v3389_v48 = vpop.eup %3388  ;;  %v499_v58 = vadd.f32 1e-05, %v467_v30  ;;  %2684 = vmatprep.mubr.f32.mxu0 %v4296_v39  ;;  %2987 = vmatpush3.bf16.msra.mxu1 %v4267_v41  ;;  %v580_v55 = vmul.f32 %v4274_v35, %v542_v46  ;;  %v4317_v30 = vpack.c.bf16 %v1136_v62, %v1135_v61 }
 0x1f3   :  { %v482_v49 = vadd.f32 1e-05, %v450_v31  ;;  %v3391_v43 = vpop.eup %3390  ;;  %v428_v54 = vpop.xlane.xlu1 %427  ;;  %v4307_v10 = vadd.f32 %v4280_v40, %v597_v23  ;;  %v560_v51 = vmul.f32 %v3389_v48, %v4131_v2  ;;  %2989 = vmatprep.subr.bf16.mxu1 %v2988_v29  ;;  %v2996_v23 = vpack.c.bf16 %v897_v18, %v896_v1  ;;  %v1137_v48 = vld [vmem:[#allocation7 + $0x20] sm:$0xff] }
 0x1f4   :  { %v394_v25 = vpop.xlane.xlu0 %393  ;;  %3400 = vrsqrt.f32 %v499_v58  ;;  %v468_v27 = vmul.f32 0.0078125, %v428_v54  ;;  %v543_v41 = vmul.f32 %v3391_v43, %v4124_v59  ;;  %v4312_v4 = vadd.f32 %v4280_v40, %v580_v55  ;;  %v1138_v58 = vld [vmem:[#allocation7 + $0x28] sm:$0xff]  ;;  %v898_v54 = vld [vmem:[#allocation10 + $0x40] sm:$0xff] }
 0x1f5   :  { %v451_v0 = vmul.f32 0.0078125, %v394_v25  ;;  %3402 = vrsqrt.f32 %v482_v49  ;;  %2711 = vmatprep.mubr.f32.mxu1 %v4307_v10  ;;  %v598_v44 = vmul.f32 %v4274_v35, %v560_v51  ;;  %v899_v25 = vld [vmem:[#allocation10 + $0x48] sm:$0xff] }
 0x1f6   :  { %v3393_v2 = vpop.eup %3392  ;;  %v500_v50 = vadd.f32 1e-05, %v468_v27  ;;  %v581_v7 = vmul.f32 %v4274_v35, %v543_v41  ;;  %2991 = vmatpush3.bf16.msra.mxu1 %v2988_v29  ;;  %2685 = vmatmul.mubr.f32.vlgmr.msra.gmra.mrb[0].mxu0 %v4312_v4  ;;  %v4333_v27 = vpack.c.bf16 %v1138_v58, %v1137_v48 }
 0x1f7   :  { %v483_v36 = vadd.f32 1e-05, %v451_v0  ;;  %v3395_v31 = vpop.eup %3394  ;;  %v430_v59 = vpop.xlane.xlu1 %429  ;;  %v4321_v42 = vadd.f32 %v4280_v40, %v598_v44  ;;  %v561_v46 = vmul.f32 %v3393_v2, %v4141_v37  ;;  %2993 = vmatprep.subr.bf16.mxu1 %v2992_v57  ;;  %3018 = vmatpush3.bf16.msra.mxu0 %v4303_v52  ;;  %v3000_v2 = vpack.c.bf16 %v899_v25, %v898_v54 }
 0x1f8   :  { %v396_v32 = vpop.xlane.xlu0 %395  ;;  %3404 = vrsqrt.f32 %v500_v50  ;;  %v469_v49 = vmul.f32 0.0078125, %v430_v59  ;;  %v4325_v29 = vadd.f32 %v4280_v40, %v581_v7  ;;  %v544_v55 = vmul.f32 %v3395_v31, %v4134_v3  ;;  %3019 = vmatprep.subr.bf16.mxu0 %v3750_v14  ;;  %v1139_v50 = vld [vmem:[#allocation7 + $0x30] sm:$0xff] }
 0x1f9   :  { %v452_v43 = vmul.f32 0.0078125, %v396_v32  ;;  %3406 = vrsqrt.f32 %v483_v36  ;;  %2712 = vmatmul.mubr.f32.gmra.mrb[2].mxu1 %v4321_v42  ;;  %v599_v37 = vmul.f32 %v4274_v35, %v561_v46  ;;  %v1140_v36 = vld [vmem:[#allocation7 + $0x38] sm:$0xff]  ;;  %v900_v59 = vld [vmem:[#allocation10 + $0x50] sm:$0xff] }
 0x1fa   :  { %v3397_v51 = vpop.eup %3396  ;;  %v501_v61 = vadd.f32 1e-05, %v469_v49  ;;  %2687 = vmatprep.mubr.f32.mxu0 %v4325_v29  ;;  %2995 = vmatpush3.bf16.msra.mxu1 %v2992_v57  ;;  %v582_v18 = vmul.f32 %v4274_v35, %v544_v55  ;;  %v901_v32 = vld [vmem:[#allocation10 + $0x58] sm:$0xff] }
 0x1fb   :  { %v484_v62 = vadd.f32 1e-05, %v452_v43  ;;  %v3399_v0 = vpop.eup %3398  ;;  %v432_v41 = vpop.xlane.xlu1 %431  ;;  %v4337_v44 = vadd.f32 %v4280_v40, %v599_v37  ;;  %v562_v3 = vmul.f32 %v3397_v51, %v4151_v8  ;;  %2997 = vmatprep.subr.bf16.mxu1 %v2996_v23  ;;  %3021 = vmatpush3.bf16.msra.mxu0 %v4317_v30 }
 0x1fc   :  { %v398_v1 = vpop.xlane.xlu0 %397  ;;  %3408 = vrsqrt.f32 %v501_v61  ;;  %v470_v7 = vmul.f32 0.0078125, %v432_v41  ;;  %v545_v57 = vmul.f32 %v3399_v0, %v4144_v6  ;;  %v4343_v46 = vadd.f32 %v4280_v40, %v582_v18  ;;  %3022 = vmatprep.subr.bf16.mxu0 %v3750_v14  ;;  %v1142_v0 = vld [vmem:[#allocation7 + $0x48] sm:$0xff]  ;;  %v902_v18 = vld [vmem:[#allocation10 + $0x60] sm:$0xff] }
 0x1fd   :  { %v453_v31 = vmul.f32 0.0078125, %v398_v1  ;;  %3410 = vrsqrt.f32 %v484_v62  ;;  %2714 = vmatprep.mubr.f32.mxu1 %v4337_v44  ;;  %v600_v8 = vmul.f32 %v4274_v35, %v562_v3  ;;  %v4349_v6 = vpack.c.bf16 %v1140_v36, %v1139_v50  ;;  %v1141_v62 = vld [vmem:[#allocation7 + $0x40] sm:$0xff]  ;;  %v903_v3 = vld [vmem:[#allocation10 + $0x68] sm:$0xff] }
 0x1fe   :  { %v3401_v48 = vpop.eup %3400  ;;  %v502_v58 = vadd.f32 1e-05, %v470_v7  ;;  %v583_v43 = vmul.f32 %v4274_v35, %v545_v57  ;;  %2999 = vmatpush3.bf16.msra.mxu1 %v2996_v23  ;;  %2688 = vmatmul.mubr.f32.gmra.mrb[2].mxu0 %v4343_v46  ;;  %v3004_v61 = vpack.c.bf16 %v901_v32, %v900_v59  ;;  %v4365_v57 = vpack.c.bf16 %v1142_v0, %v1141_v62  ;;  %v905_v62 = vld [vmem:[#allocation10 + $0x78] sm:$0xff] }
 0x1ff   :  { %v485_v49 = vadd.f32 1e-05, %v453_v31  ;;  %v3403_v54 = vpop.eup %3402  ;;  %v434_v25 = vpop.xlane.xlu1 %433  ;;  %v4353_v37 = vadd.f32 %v4280_v40, %v600_v8  ;;  %v563_v51 = vmul.f32 %v3401_v48, %v4161_v60  ;;  %3001 = vmatprep.subr.bf16.mxu1 %v3000_v2  ;;  %3024 = vmatpush3.bf16.msra.mxu0 %v4333_v27 }
 0x200   :  { %v400_v55 = vpop.xlane.xlu0 %399  ;;  %3412 = vrsqrt.f32 %v502_v58  ;;  %v471_v41 = vmul.f32 0.0078125, %v434_v25  ;;  %v4357_v23 = vadd.f32 %v4280_v40, %v583_v43  ;;  %v546_v50 = vmul.f32 %v3403_v54, %v4154_v9  ;;  %3025 = vmatprep.subr.bf16.mxu0 %v3750_v14  ;;  %v1143_v43 = vld [vmem:[#allocation7 + $0x50] sm:$0xff]  ;;  %v1144_v54 = vld [vmem:[#allocation7 + $0x58] sm:$0xff] }
 0x201   :  { %v454_v1 = vmul.f32 0.0078125, %v400_v55  ;;  %3414 = vrsqrt.f32 %v485_v49  ;;  %2715 = vmatmul.mubr.f32.gmra.mrb[4].mxu1 %v4353_v37  ;;  %v601_v60 = vmul.f32 %v4274_v35, %v563_v51  ;;  %v3008_v49 = vpack.c.bf16 %v903_v3, %v902_v18  ;;  %v904_v51 = vld [vmem:[#allocation10 + $0x70] sm:$0xff] }
 0x202   :  { %v3405_v36 = vpop.eup %3404  ;;  %v503_v7 = vadd.f32 1e-05, %v471_v41  ;;  %2690 = vmatprep.mubr.f32.mxu0 %v4357_v23  ;;  %3003 = vmatpush3.bf16.msra.mxu1 %v3000_v2  ;;  %v584_v48 = vmul.f32 %v4274_v35, %v546_v50 }
 0x203   :  { %v486_v31 = vadd.f32 1e-05, %v454_v1  ;;  %v3407_v59 = vpop.eup %3406  ;;  %v436_v32 = vpop.xlane.xlu1 %435  ;;  %v4369_v58 = vadd.f32 %v4280_v40, %v601_v60  ;;  %v564_v9 = vmul.f32 %v3405_v36, %v4171_v13  ;;  %3005 = vmatprep.subr.bf16.mxu1 %v3004_v61  ;;  %3027 = vmatpush3.bf16.msra.mxu0 %v4349_v6 }
 0x204   :  { %v402_v8 = vpop.xlane.xlu0 %401  ;;  %3416 = vrsqrt.f32 %v503_v7  ;;  %v472_v25 = vmul.f32 0.0078125, %v436_v32  ;;  %v547_v2 = vmul.f32 %v3407_v59, %v4164_v11  ;;  %v4375_v0 = vadd.f32 %v4280_v40, %v584_v48  ;;  %3028 = vmatprep.subr.bf16.mxu0 %v3750_v14 }
 0x205   :  { %v455_v55 = vmul.f32 0.0078125, %v402_v8  ;;  %3418 = vrsqrt.f32 %v486_v31  ;;  %2717 = vmatprep.mubr.f32.mxu1 %v4369_v58  ;;  %v602_v13 = vmul.f32 %v4274_v35, %v564_v9  ;;  %v4381_v11 = vpack.c.bf16 %v1144_v54, %v1143_v43  ;;  %v1146_v9 = vld [vmem:[#allocation7 + $0x68] sm:$0xff] }
 0x206   :  { %v3409_v41 = vpop.eup %3408  ;;  %v504_v1 = vadd.f32 1e-05, %v472_v25  ;;  %v585_v3 = vmul.f32 %v4274_v35, %v547_v2  ;;  %3007 = vmatpush3.bf16.msra.mxu1 %v3004_v61  ;;  %2691 = vmatmul.mubr.f32.gmra.mrb[4].mxu0 %v4375_v0  ;;  %v3012_v59 = vpack.c.bf16 %v905_v62, %v904_v51  ;;  %v1145_v61 = vld [vmem:[#allocation7 + $0x60] sm:$0xff] }
 0x207   :  { %v487_v18 = vadd.f32 1e-05, %v455_v55  ;;  %v3411_v50 = vpop.eup %3410  ;;  %v438_v60 = vpop.xlane.xlu1 %437  ;;  %v4385_v7 = vadd.f32 %v4280_v40, %v602_v13  ;;  %v565_v31 = vmul.f32 %v3409_v41, %v4181_v15  ;;  %3009 = vmatprep.subr.bf16.mxu1 %v3008_v49  ;;  %3030 = vmatpush3.bf16.msra.mxu0 %v4365_v57 }
 0x208   :  { %v404_v36 = vpop.xlane.xlu0 %403  ;;  %3420 = vrsqrt.f32 %v504_v1  ;;  %v473_v32 = vmul.f32 0.0078125, %v438_v60  ;;  %v4389_v48 = vadd.f32 %v4280_v40, %v585_v3  ;;  %v548_v43 = vmul.f32 %v3411_v50, %v4174_v34  ;;  %3031 = vmatprep.subr.bf16.mxu0 %v3750_v14  ;;  %v1148_v60 = vld [vmem:[#allocation7 + $0x78] sm:$0xff] }
 0x209   :  { %v456_v8 = vmul.f32 0.0078125, %v404_v36  ;;  %3422 = vrsqrt.f32 %v487_v18  ;;  %2718 = vmatmul.mubr.f32.gmra.mrb[6].mxu1 %v4385_v7  ;;  %v603_v54 = vmul.f32 %v4274_v35, %v565_v31  ;;  %v4402_v1 = vpack.c.bf16 %v1146_v9, %v1145_v61 }
 0x20a   :  { %v3413_v15 = vpop.eup %3412  ;;  %v505_v25 = vadd.f32 1e-05, %v473_v32  ;;  %2693 = vmatprep.mubr.f32.mxu0 %v4389_v48  ;;  %3011 = vmatpush3.bf16.msra.mxu1 %v3008_v49  ;;  %v586_v13 = vmul.f32 %v4274_v35, %v548_v43  ;;  %v1147_v49 = vld [vmem:[#allocation7 + $0x70] sm:$0xff] }
 0x20b   :  { %v488_v55 = vadd.f32 1e-05, %v456_v8  ;;  %v3415_v2 = vpop.eup %3414  ;;  %v440_v51 = vpop.xlane.xlu1 %439  ;;  %v4399_v41 = vadd.f32 %v4280_v40, %v603_v54  ;;  %v566_v34 = vmul.f32 %v3413_v15, %v4191_v17  ;;  %3013 = vmatprep.subr.bf16.mxu1 %v3012_v59  ;;  %3033 = vmatpush3.bf16.msra.mxu0 %v4381_v11 }
 0x20c   :  { %v406_v62 = vpop.xlane.xlu0 %405  ;;  %3424 = vrsqrt.f32 %v505_v25  ;;  %v474_v18 = vmul.f32 0.0078125, %v440_v51  ;;  %v549_v50 = vmul.f32 %v3415_v2, %v4184_v45  ;;  %v4407_v36 = vadd.f32 %v4280_v40, %v586_v13  ;;  %3034 = vmatprep.subr.bf16.mxu0 %v3750_v14 }
 0x20d   :  { %v457_v3 = vmul.f32 0.0078125, %v406_v62  ;;  %3426 = vrsqrt.f32 %v488_v55  ;;  %2720 = vmatprep.mubr.f32.mxu1 %v4399_v41  ;;  %v604_v17 = vmul.f32 %v4274_v35, %v566_v34  ;;  %v4418_v25 = vpack.c.bf16 %v1148_v60, %v1147_v49 }
 0x20e   :  { %v3417_v31 = vpop.eup %3416  ;;  %v506_v32 = vadd.f32 1e-05, %v474_v18  ;;  %v587_v61 = vmul.f32 %v4274_v35, %v549_v50  ;;  %3015 = vmatpush3.bf16.msra.mxu1 %v3012_v59  ;;  %2694 = vmatmul.mubr.f32.gmra.mrb[6].mxu0 %v4407_v36 }
 0x20f   :  { %v489_v8 = vadd.f32 1e-05, %v457_v3  ;;  %v3419_v45 = vpop.eup %3418  ;;  %v442_v9 = vpop.xlane.xlu1 %441  ;;  %v4415_v54 = vadd.f32 %v4280_v40, %v604_v17  ;;  %v567_v15 = vmul.f32 %v3417_v31, %v4201_v19  ;;  %3036 = vmatpush3.bf16.msra.mxu0 %v4402_v1 }
 0x210   :  { %v408_v43 = vpop.xlane.xlu0 %407  ;;  %3428 = vrsqrt.f32 %v506_v32  ;;  %v475_v55 = vmul.f32 0.0078125, %v442_v9  ;;  %v4421_v51 = vadd.f32 %v4280_v40, %v587_v61  ;;  %v550_v59 = vmul.f32 %v3419_v45, %v4194_v56  ;;  %3037 = vmatprep.subr.bf16.mxu0 %v3750_v14 }
 0x211   :  { %v458_v2 = vmul.f32 0.0078125, %v408_v43  ;;  %3430 = vrsqrt.f32 %v489_v8  ;;  %2721 = vmatmul.mubr.f32.gmra.mrb[8].mxu1 %v4415_v54  ;;  %v605_v62 = vmul.f32 %v4274_v35, %v567_v15 }
 0x212   :  { %v3421_v19 = vpop.eup %3420  ;;  %v507_v13 = vadd.f32 1e-05, %v475_v55  ;;  %2696 = vmatprep.mubr.f32.mxu0 %v4421_v51  ;;  %v588_v49 = vmul.f32 %v4274_v35, %v550_v59 }
 0x213   :  { %v490_v34 = vadd.f32 1e-05, %v458_v2  ;;  %v3423_v18 = vpop.eup %3422  ;;  %v444_v3 = vpop.xlane.xlu1 %443  ;;  %v4431_v60 = vadd.f32 %v4280_v40, %v605_v62  ;;  %v568_v17 = vmul.f32 %v3421_v19, %v4211_v20  ;;  %3039 = vmatpush3.bf16.msra.mxu0 %v4418_v25 }
 0x214   :  { %v410_v50 = vpop.xlane.xlu0 %409  ;;  %3432 = vrsqrt.f32 %v507_v13  ;;  %v476_v56 = vmul.f32 0.0078125, %v444_v3  ;;  %v551_v32 = vmul.f32 %v3423_v18, %v4204_v5  ;;  %v4437_v8 = vadd.f32 %v4280_v40, %v588_v49 }
 0x215   :  { %v459_v31 = vmul.f32 0.0078125, %v410_v50  ;;  %3434 = vrsqrt.f32 %v490_v34  ;;  %2723 = vmatprep.mubr.f32.mxu1 %v4431_v60  ;;  %v606_v61 = vmul.f32 %v4274_v35, %v568_v17 }
 0x216   :  { %v3425_v45 = vpop.eup %3424  ;;  %v508_v9 = vadd.f32 1e-05, %v476_v56  ;;  %v589_v20 = vmul.f32 %v4274_v35, %v551_v32  ;;  %2697 = vmatmul.mubr.f32.gmra.mrb[8].mxu0 %v4437_v8 }
 0x217   :  { %v491_v43 = vadd.f32 1e-05, %v459_v31  ;;  %v3427_v15 = vpop.eup %3426  ;;  %v1156_v55 = vpop.xlane.xlu1 %1155  ;;  %v4444_v2 = vadd.f32 %v4280_v40, %v606_v61  ;;  %v569_v59 = vmul.f32 %v3425_v45, %v4221_v47 }
 0x218   :  { %v412_v5 = vpop.xlane.xlu0 %411  ;;  %3436 = vrsqrt.f32 %v508_v9  ;;  %v1157_v62 = vmul.f32 0.0078125, %v1156_v55  ;;  %v4448_v13 = vadd.f32 %v4280_v40, %v589_v20  ;;  %v552_v34 = vmul.f32 %v3427_v15, %v4214_v21 }
 0x219   :  { %v460_v19 = vmul.f32 0.0078125, %v412_v5  ;;  %3438 = vrsqrt.f32 %v491_v43  ;;  %2724 = vmatmul.mubr.f32.gmra.mrb[10].mxu1 %v4444_v2  ;;  %v607_v18 = vmul.f32 %v4274_v35, %v569_v59 }
 0x21a   :  { %v3429_v3 = vpop.eup %3428  ;;  %v1158_v50 = vadd.f32 1e-05, %v1157_v62  ;;  %2699 = vmatprep.mubr.f32.mxu0 %v4448_v13  ;;  %v590_v47 = vmul.f32 %v4274_v35, %v552_v34 }
 0x21b   :  { %v492_v49 = vadd.f32 1e-05, %v460_v19  ;;  %v3431_v17 = vpop.eup %3430  ;;  %v4456_v56 = vadd.f32 %v4280_v40, %v607_v18  ;;  %v570_v31 = vmul.f32 %v3429_v3, %v4231_v16 }
 0x21c   :  { %3440 = vrsqrt.f32 %v1158_v50  ;;  %v553_v32 = vmul.f32 %v3431_v17, %v4224_v22  ;;  %v628_v21 = vadd.f32 %v4280_v40, %v590_v47 }
 0x21d   :  { %3442 = vrsqrt.f32 %v492_v49  ;;  %2726 = vmatprep.mubr.f32.mxu1 %v4456_v56  ;;  %v608_v61 = vmul.f32 %v4274_v35, %v570_v31 }
 0x21e   :  { %v3433_v45 = vpop.eup %3432  ;;  %v591_v9 = vmul.f32 %v4274_v35, %v553_v32  ;;  %2700 = vmatmul.mubr.f32.gmra.mrb[10].mxu0 %v628_v21 }
 0x21f   :  { %v3435_v43 = vpop.eup %3434  ;;  %v4465_v20 = vadd.f32 %v4280_v40, %v608_v61  ;;  %v571_v16 = vmul.f32 %v3433_v45, %v4241_v63 }
 0x220   :  { %v629_v15 = vadd.f32 %v4280_v40, %v591_v9  ;;  %v554_v22 = vmul.f32 %v3435_v43, %v4234_v24 }
 0x221   :  { %2727 = vmatmul.mubr.f32.gmra.mrb[12].mxu1 %v4465_v20  ;;  %v609_v55 = vmul.f32 %v4274_v35, %v571_v16 }
 0x222   :  { %v3437_v5 = vpop.eup %3436  ;;  %2702 = vmatprep.mubr.f32.mxu0 %v629_v15  ;;  %v592_v59 = vmul.f32 %v4274_v35, %v554_v22 }
 0x223   :  { %v3439_v62 = vpop.eup %3438  ;;  %v647_v19 = vadd.f32 %v4280_v40, %v609_v55  ;;  %v572_v34 = vmul.f32 %v3437_v5, %v4251_v33 }
 0x224   :  { %v630_v18 = vadd.f32 %v4280_v40, %v592_v59  ;;  %v555_v63 = vmul.f32 %v3439_v62, %v4244_v26  ;;  %v2345_v26 = vld [vmem:[%s4742_s29] ss:$0 sm:$0xff] }
 0x225   :  { %2729 = vmatprep.mubr.f32.mxu1 %v647_v19  ;;  %v610_v24 = vmul.f32 %v4274_v35, %v572_v34 }
 0x226   :  { %v3441_v3 = vpop.eup %3440  ;;  %2703 = vmatmul.mubr.f32.gmra.mrb[12].mxu0 %v630_v18  ;;  %v593_v50 = vmul.f32 %v4274_v35, %v555_v63 }
 0x227   :  { %v3443_v49 = vpop.eup %3442  ;;  %v648_v17 = vadd.f32 %v4280_v40, %v610_v24  ;;  %v1160_v47 = vmul.f32 %v3441_v3, %v4261_v38  ;;  %v2346_v38 = vld [vmem:[%s4704_s5] ss:$0 sm:$0xff] }
 0x228   :  { %v631_v31 = vadd.f32 %v4280_v40, %v593_v50  ;;  %v556_v33 = vmul.f32 %v3443_v49, %v4254_v28  ;;  %v3752_v28 = vmov 0.0  }
 0x229   :  { %2730 = vmatmul.mubr.f32.gmra.mrb[14].mxu1 %v648_v17  ;;  %v1167_v45 = vmul.f32 %v2345_v26, %v1160_v47 }
 0x22a   :  { %2705 = vmatprep.mubr.f32.mxu0 %v631_v31  ;;  %2764 = vmatprep.mubr.f32.mxu1 %v4296_v39  ;;  %v594_v32 = vmul.f32 %v4274_v35, %v556_v33 }
 0x22b   :  { %v1174_v39 = vadd.f32 %v2346_v38, %v1167_v45 }
 0x22c   :  { %v632_v61 = vadd.f32 %v4280_v40, %v594_v32 }
 0x22d   :  { %2765 = vmatmul.mubr.f32.vlgmr.msra.gmra.mrb[16].mxu1 %v4312_v4 }
 0x22e   :  { %2706 = vmatmul.mubr.f32.gmra.mrb[14].mxu0 %v632_v61  ;;  %2767 = vmatprep.mubr.f32.mxu1 %v4325_v29 }
 0x22f   :  { %2844 = vmatprep.mubr.msk.f32.mxu0 %vm3751_vm0, %v3752_v28 }
 0x231   :  { %2768 = vmatmul.mubr.f32.gmra.mrb[18].mxu1 %v4343_v46 }
 0x232   :  { %2845 = vmatmul.mubr.f32.vlgmr.msra.gmra.mrb[16].mxu0 %v1174_v39  ;;  %2770 = vmatprep.mubr.f32.mxu1 %v4357_v23 }
 0x235   :  { %2771 = vmatmul.mubr.f32.gmra.mrb[20].mxu1 %v4375_v0 }
 0x236   :  { %2773 = vmatprep.mubr.f32.mxu1 %v4389_v48 }
 0x239   :  { %2774 = vmatmul.mubr.f32.gmra.mrb[22].mxu1 %v4407_v36 }
 0x23a   :  { %2776 = vmatprep.mubr.f32.mxu1 %v4421_v51 }
 0x23d   :  { %2777 = vmatmul.mubr.f32.gmra.mrb[24].mxu1 %v4437_v8 }
 0x23e   :  { %2779 = vmatprep.mubr.f32.mxu1 %v4448_v13 }
 0x241   :  { %2780 = vmatmul.mubr.f32.gmra.mrb[26].mxu1 %v628_v21 }
 0x242   :  { %2782 = vmatprep.mubr.f32.mxu1 %v629_v15 }
 0x245   :  { %2783 = vmatmul.mubr.f32.gmra.mrb[28].mxu1 %v630_v18 }
 0x246   :  { %2785 = vmatprep.mubr.f32.mxu1 %v631_v31 }
 0x249   :  { %2786 = vmatmul.mubr.f32.gmra.mrb[30].mxu1 %v632_v61 }
 0x24a   :  { %2788 = vmatprep.mubr.f32.mxu1 %v4284_v53 }
 0x24d   :  { %2789 = vmatmul.mubr.f32.gmra.mrb[32].mxu1 %v4292_v12 }
 0x24e   :  { %2791 = vmatprep.mubr.f32.mxu1 %v4307_v10 }
 0x251   :  { %2792 = vmatmul.mubr.f32.gmra.mrb[34].mxu1 %v4321_v42 }
 0x252   :  { %2794 = vmatprep.mubr.f32.mxu1 %v4337_v44 }
 0x255   :  { %2795 = vmatmul.mubr.f32.gmra.mrb[36].mxu1 %v4353_v37 }
 0x256   :  { %2797 = vmatprep.mubr.f32.mxu1 %v4369_v58 }
 0x259   :  { %2798 = vmatmul.mubr.f32.gmra.mrb[38].mxu1 %v4385_v7 }
 0x25a   :  { %2800 = vmatprep.mubr.f32.mxu1 %v4399_v41 }
 0x25d   :  { %2801 = vmatmul.mubr.f32.gmra.mrb[40].mxu1 %v4415_v54 }
 0x25e   :  { %2803 = vmatprep.mubr.f32.mxu1 %v4431_v60 }
 0x261   :  { %2804 = vmatmul.mubr.f32.gmra.mrb[42].mxu1 %v4444_v2 }
 0x262   :  { %2806 = vmatprep.mubr.f32.mxu1 %v4456_v56 }
 0x265   :  { %2807 = vmatmul.mubr.f32.gmra.mrb[44].mxu1 %v4465_v20 }
 0x266   :  { %2809 = vmatprep.mubr.f32.mxu1 %v647_v19 }
 0x269   :  { %2810 = vmatmul.mubr.f32.gmra.mrb[46].mxu1 %v648_v17 }
 0x2c4   :  { %v2710_v35 = vpop.f32.mrb[0].mxu1 }
 0x2c5   :  { %v811_v40 = vpop.f32.mrb[1].mxu1 }
 0x2c6   :  { %v4518_v53 = vpack.c.bf16 %v2710_v35, %v811_v40 }
 0x2c8   :  { %3041 = vmatprep.subr.bf16.mxu1 %v4518_v53 }
 0x2c9   :  { %v2686_v12 = vpop.f32.mrb[0].mxu0 }
 0x2ca   :  { %v731_v10 = vpop.f32.mrb[1].mxu0 }
 0x2cb   :  { %v4521_v4 = vpack.c.bf16 %v2686_v12, %v731_v10 }
 0x2cc   :  { %v2713_v42 = vpop.f32.mrb[2].mxu1 }
 0x2cd   :  { %v821_v29 = vpop.f32.mrb[3].mxu1  ;;  %3043 = vmatpush3.bf16.xpose.msra.mxu1 %v4521_v4 }
 0x2ce   :  { %v4524_v44 = vpack.c.bf16 %v2713_v42, %v821_v29 }
 0x2d0   :  { %3045 = vmatprep.subr.bf16.mxu1 %v4524_v44 }
 0x2d1   :  { %v2689_v46 = vpop.f32.mrb[2].mxu0 }
 0x2d2   :  { %v741_v37 = vpop.f32.mrb[3].mxu0 }
 0x2d3   :  { %v4527_v23 = vpack.c.bf16 %v2689_v46, %v741_v37 }
 0x2d4   :  { %v2716_v58 = vpop.f32.mrb[4].mxu1 }
 0x2d5   :  { %v831_v0 = vpop.f32.mrb[5].mxu1  ;;  %3047 = vmatpush3.bf16.xpose.msra.mxu1 %v4527_v23 }
 0x2d6   :  { %v4530_v7 = vpack.c.bf16 %v2716_v58, %v831_v0 }
 0x2d8   :  { %3049 = vmatprep.subr.bf16.mxu1 %v4530_v7 }
 0x2d9   :  { %v2692_v48 = vpop.f32.mrb[4].mxu0 }
 0x2da   :  { %v751_v41 = vpop.f32.mrb[5].mxu0 }
 0x2db   :  { %v4533_v36 = vpack.c.bf16 %v2692_v48, %v751_v41 }
 0x2dc   :  { %v2719_v54 = vpop.f32.mrb[6].mxu1 }
 0x2dd   :  { %v841_v51 = vpop.f32.mrb[7].mxu1  ;;  %3051 = vmatpush3.bf16.xpose.msra.mxu1 %v4533_v36 }
 0x2de   :  { %v4536_v60 = vpack.c.bf16 %v2719_v54, %v841_v51 }
 0x2e0   :  { %3053 = vmatprep.subr.bf16.mxu1 %v4536_v60 }
 0x2e1   :  { %v2695_v8 = vpop.f32.mrb[6].mxu0 }
 0x2e2   :  { %v761_v2 = vpop.f32.mrb[7].mxu0 }
 0x2e3   :  { %v4539_v13 = vpack.c.bf16 %v2695_v8, %v761_v2 }
 0x2e4   :  { %v2722_v56 = vpop.f32.mrb[8].mxu1 }
 0x2e5   :  { %v851_v21 = vpop.f32.mrb[9].mxu1  ;;  %3055 = vmatpush3.bf16.xpose.msra.mxu1 %v4539_v13 }
 0x2e6   :  { %v4542_v9 = vpack.c.bf16 %v2722_v56, %v851_v21 }
 0x2e8   :  { %3057 = vmatprep.subr.bf16.mxu1 %v4542_v9 }
 0x2e9   :  { %v2698_v43 = vpop.f32.mrb[8].mxu0 }
 0x2ea   :  { %v771_v20 = vpop.f32.mrb[9].mxu0 }
 0x2eb   :  { %v4545_v16 = vpack.c.bf16 %v2698_v43, %v771_v20 }
 0x2ec   :  { %v2725_v15 = vpop.f32.mrb[10].mxu1 }
 0x2ed   :  { %v861_v22 = vpop.f32.mrb[11].mxu1  ;;  %3059 = vmatpush3.bf16.xpose.msra.mxu1 %v4545_v16 }
 0x2ee   :  { %v4548_v55 = vpack.c.bf16 %v2725_v15, %v861_v22 }
 0x2f0   :  { %3061 = vmatprep.subr.bf16.mxu1 %v4548_v55 }
 0x2f1   :  { %v2701_v5 = vpop.f32.mrb[10].mxu0 }
 0x2f2   :  { %v781_v59 = vpop.f32.mrb[11].mxu0 }
 0x2f3   :  { %v4551_v62 = vpack.c.bf16 %v2701_v5, %v781_v59 }
 0x2f4   :  { %v2728_v19 = vpop.f32.mrb[12].mxu1 }
 0x2f5   :  { %v871_v34 = vpop.f32.mrb[13].mxu1  ;;  %3063 = vmatpush3.bf16.xpose.msra.mxu1 %v4551_v62 }
 0x2f6   :  { %v4554_v18 = vpack.c.bf16 %v2728_v19, %v871_v34 }
 0x2f8   :  { %3065 = vmatprep.subr.bf16.mxu1 %v4554_v18 }
 0x2f9   :  { %v2704_v63 = vpop.f32.mrb[12].mxu0 }
 0x2fa   :  { %v791_v24 = vpop.f32.mrb[13].mxu0 }
 0x2fb   :  { %v4557_v3 = vpack.c.bf16 %v2704_v63, %v791_v24 }
 0x2fc   :  { %v2731_v50 = vpop.f32.mrb[14].mxu1 }
 0x2fd   :  { %v881_v49 = vpop.f32.mrb[15].mxu1  ;;  %3067 = vmatpush3.bf16.xpose.msra.mxu1 %v4557_v3 }
 0x2fe   :  { %v4560_v17 = vpack.c.bf16 %v2731_v50, %v881_v49 }
 0x300   :  { %v2766_v47 = vpop.f32.mrb[16].mxu1  ;;  %3069 = vmatprep.subr.bf16.mxu1 %v4560_v17 }
 0x301   :  { %v2707_v31 = vpop.f32.mrb[14].mxu0  ;;  %v972_v33 = vpop.f32.mrb[17].mxu1 }
 0x302   :  { %v801_v26 = vpop.f32.mrb[15].mxu0  ;;  %v3074_v32 = vpack.c.bf16 %v2766_v47, %v972_v33 }
 0x303   :  { %v4563_v61 = vpack.c.bf16 %v2707_v31, %v801_v26 }
 0x304   :  { %v2769_v45 = vpop.f32.mrb[18].mxu1 }
 0x305   :  { %v1241_v38 = vpop.f32.mrb[16].mxu0  ;;  %v982_v39 = vpop.f32.mrb[19].mxu1  ;;  %3071 = vmatpush3.bf16.xpose.msra.mxu1 %v4563_v61 }
 0x306   :  { %v3078_v35 = vpack.c.bf16 %v2769_v45, %v982_v39  ;;  %v2846_v40 = vpop.f32.mrb[17].mxu0  ;;  %2495 = vmatprep.mubr.f32.mxu1 %v1241_v38 }
 0x308   :  { %v2772_v12 = vpop.f32.mrb[20].mxu1 }
 0x309   :  { %v992_v10 = vpop.f32.mrb[21].mxu1 }
 0x30a   :  { %v3082_v42 = vpack.c.bf16 %v2772_v12, %v992_v10 }
 0x30c   :  { %v2775_v29 = vpop.f32.mrb[22].mxu1  ;;  %2496 = vmatmul.mubr.f32.vlgmr.msra.gmra.mrb[48].mxu1 %v1241_v38 }
 0x30d   :  { %v1002_v46 = vpop.f32.mrb[23].mxu1  ;;  %1558 = vmatprep.mubr.f32.mxu1 %v3752_v28 }
 0x30e   :  { %v3086_v37 = vpack.c.bf16 %v2775_v29, %v1002_v46 }
 0x310   :  { %v2778_v58 = vpop.f32.mrb[24].mxu1 }
 0x311   :  { %v1012_v0 = vpop.f32.mrb[25].mxu1 }
 0x312   :  { %v3090_v48 = vpack.c.bf16 %v2778_v58, %v1012_v0 }
 0x314   :  { %v2781_v41 = vpop.f32.mrb[26].mxu1 }
 0x315   :  { %v1022_v54 = vpop.f32.mrb[27].mxu1 }
 0x316   :  { %v3094_v51 = vpack.c.bf16 %v2781_v41, %v1022_v54 }
 0x318   :  { %v2784_v8 = vpop.f32.mrb[28].mxu1 }
 0x319   :  { %v1032_v2 = vpop.f32.mrb[29].mxu1 }
 0x31a   :  { %v3098_v56 = vpack.c.bf16 %v2784_v8, %v1032_v2 }
 0x31c   :  { %v2787_v21 = vpop.f32.mrb[30].mxu1 }
 0x31d   :  { %v1042_v43 = vpop.f32.mrb[31].mxu1 }
 0x31e   :  { %v3102_v20 = vpack.c.bf16 %v2787_v21, %v1042_v43 }
 0x320   :  { %v2790_v15 = vpop.f32.mrb[32].mxu1 }
 0x321   :  { %v1052_v22 = vpop.f32.mrb[33].mxu1 }
 0x322   :  { %v3072_v5 = vpack.c.bf16 %v2790_v15, %v1052_v22 }
 0x324   :  { %v2793_v59 = vpop.f32.mrb[34].mxu1  ;;  %3073 = vmatprep.subr.bf16.mxu0 %v3072_v5 }
 0x325   :  { %v1062_v19 = vpop.f32.mrb[35].mxu1  ;;  %3075 = vmatpush3.bf16.msra.mxu0 %v3074_v32 }
 0x326   :  { %v3076_v34 = vpack.c.bf16 %v2793_v59, %v1062_v19 }
 0x328   :  { %v2796_v63 = vpop.f32.mrb[36].mxu1  ;;  %3077 = vmatprep.subr.bf16.mxu0 %v3076_v34 }
 0x329   :  { %v1072_v24 = vpop.f32.mrb[37].mxu1  ;;  %3079 = vmatpush3.bf16.msra.mxu0 %v3078_v35 }
 0x32a   :  { %v3080_v50 = vpack.c.bf16 %v2796_v63, %v1072_v24 }
 0x32c   :  { %v2799_v49 = vpop.f32.mrb[38].mxu1  ;;  %3081 = vmatprep.subr.bf16.mxu0 %v3080_v50 }
 0x32d   :  { %v1082_v47 = vpop.f32.mrb[39].mxu1  ;;  %3083 = vmatpush3.bf16.msra.mxu0 %v3082_v42 }
 0x32e   :  { %v3084_v31 = vpack.c.bf16 %v2799_v49, %v1082_v47 }
 0x330   :  { %v2802_v33 = vpop.f32.mrb[40].mxu1  ;;  %3085 = vmatprep.subr.bf16.mxu0 %v3084_v31 }
 0x331   :  { %v1092_v26 = vpop.f32.mrb[41].mxu1  ;;  %3087 = vmatpush3.bf16.msra.mxu0 %v3086_v37 }
 0x332   :  { %v3088_v45 = vpack.c.bf16 %v2802_v33, %v1092_v26 }
 0x334   :  { %v2805_v38 = vpop.f32.mrb[42].mxu1  ;;  %3089 = vmatprep.subr.bf16.mxu0 %v3088_v45 }
 0x335   :  { %v1102_v39 = vpop.f32.mrb[43].mxu1  ;;  %3091 = vmatpush3.bf16.msra.mxu0 %v3090_v48 }
 0x336   :  { %v3092_v32 = vpack.c.bf16 %v2805_v38, %v1102_v39 }
 0x338   :  { %v2808_v40 = vpop.f32.mrb[44].mxu1  ;;  %3093 = vmatprep.subr.bf16.mxu0 %v3092_v32 }
 0x339   :  { %v1112_v12 = vpop.f32.mrb[45].mxu1  ;;  %3095 = vmatpush3.bf16.msra.mxu0 %v3094_v51 }
 0x33a   :  { %v3096_v35 = vpack.c.bf16 %v2808_v40, %v1112_v12 }
 0x33c   :  { %v2811_v10 = vpop.f32.mrb[46].mxu1  ;;  %3097 = vmatprep.subr.bf16.mxu0 %v3096_v35 }
 0x33d   :  { %v1122_v29 = vpop.f32.mrb[47].mxu1  ;;  %3099 = vmatpush3.bf16.msra.mxu0 %v3098_v56 }
 0x33e   :  { %v3100_v42 = vpack.c.bf16 %v2811_v10, %v1122_v29 }
 0x340   :  { %3101 = vmatprep.subr.bf16.mxu0 %v3100_v42 }
 0x341   :  { %3103 = vmatpush3.bf16.msra.mxu0 %v3102_v20 }
 0x342   :  { %3136 = vmatprep.subr.bf16.mxu0 %v3750_v14 }
 0x3df   :  { %v1311_v46 = vpop.f32.mrb[48].mxu1 }
 0x3e0   :  { %v1316_v37 = vmul.f32 0.088388346, %v1311_v46  ;;  %v1313_v58 = vpop.f32.mrb[49].mxu1 }
 0x3e1   :  { %v1317_v0 = vmul.f32 0.088388346, %v1313_v58  ;;  %v1433_v58 = vld [vmem:[#allocation11 + $0x20] sm:$0xff] }
 0x3e2   :  { %v1318_v48 = vrot.slane %v1316_v37, 4 }
 0x3e3   :  { %v1324_v41 = vrot.slane %v1317_v0, 4 }
 0x3e4   :  { %v1319_v54 = vmax.f32 %v1316_v37, %v1318_v48 }
 0x3e5   :  { %v1325_v8 = vmax.f32 %v1317_v0, %v1324_v41  ;;  %v1432_v41 = vld [vmem:[#allocation11 + $0x18] sm:$0xff] }
 0x3e6   :  { %v1320_v2 = vrot.slane %v1319_v54, 2 }
 0x3e7   :  { %v1326_v51 = vrot.slane %v1325_v8, 2 }
 0x3e8   :  { %v1321_v21 = vmax.f32 %v1319_v54, %v1320_v2  ;;  %v1439_v2 = vld [vmem:[#allocation11 + $0x50] sm:$0xff] }
 0x3e9   :  { %v1327_v43 = vmax.f32 %v1325_v8, %v1326_v51  ;;  %v1436_v8 = vld [vmem:[#allocation11 + $0x38] sm:$0xff]  ;;  %v1435_v51 = vld [vmem:[#allocation11 + $0x30] sm:$0xff] }
 0x3ea   :  { %v1322_v15 = vrot.slane %v1321_v21, 1 }
 0x3eb   :  { %v1328_v22 = vrot.slane %v1327_v43, 1 }
 0x3ec   :  { %v1323_v56 = vmax.f32 %v1321_v21, %v1322_v15  ;;  %v3108_v21 = vpack.c.bf16 %v1439_v2, %v1436_v8  ;;  %v1472_v8 = vld [vmem:[#allocation11 + $0x158] sm:$0xff]  ;;  %v1475_v2 = vld [vmem:[#allocation11 + $0x170] sm:$0xff] }
 0x3ed   :  { %v1329_v5 = vmax.f32 %v1327_v43, %v1328_v22  ;;  %v1438_v43 = vld [vmem:[#allocation11 + $0x48] sm:$0xff] }
 0x3ee   :  { %v1330_v59 = vsub.f32 %v1316_v37, %v1323_v56  ;;  %v1430_v37 = vld [vmem:[#allocation11 + $0x8] sm:$0xff]  ;;  %v3110_v15 = vpack.c.bf16 %v1438_v43, %v1435_v51  ;;  %v1445_v56 = vld [vmem:[#allocation11 + $0x80] sm:$0xff]  ;;  %v3132_v51 = vpack.c.bf16 %v1475_v2, %v1472_v8  ;;  %v1638_v2 = vld [vmem:[#allocation13 + $0x18] sm:$0xff] }
 0x3ef   :  { %v1331_v20 = vsub.f32 %v1317_v0, %v1329_v5  ;;  %v1429_v0 = vld [vmem:[#allocation11] sm:$0xff]  ;;  %v3104_v48 = vpack.c.bf16 %v1433_v58, %v1430_v37  ;;  %v1442_v22 = vld [vmem:[#allocation11 + $0x68] sm:$0xff] }
 0x3f0   :  { %v1332_v19 = vmul.f32 1.442695, %v1330_v59  ;;  %v3106_v54 = vpack.c.bf16 %v1432_v41, %v1429_v0  ;;  %v3112_v5 = vpack.c.bf16 %v1445_v56, %v1442_v22  ;;  %v1441_v59 = vld [vmem:[#allocation11 + $0x60] sm:$0xff]  ;;  %v1466_v37 = vld [vmem:[#allocation11 + $0x128] sm:$0xff]  ;;  %v1468_v41 = vld [vmem:[#allocation11 + $0x138] sm:$0xff] }
 0x3f1   :  { %v1334_v34 = vmul.f32 1.442695, %v1331_v20  ;;  %3105 = vmatprep.subr.bf16.mxu1 %v3104_v48  ;;  %v1444_v20 = vld [vmem:[#allocation11 + $0x78] sm:$0xff]  ;;  %v1469_v58 = vld [vmem:[#allocation11 + $0x140] sm:$0xff]  ;;  %v1434_v22 = vld [vmem:[#allocation11 + $0x28] sm:$0xff] }
 0x3f2   :  { %3444 = vpow2.f32 %v1332_v19  ;;  %3107 = vmatpush1.bf16.msra.mxu1 %v3106_v54  ;;  %v3114_v19 = vpack.c.bf16 %v1444_v20, %v1441_v59  ;;  %v3128_v0 = vpack.c.bf16 %v1469_v58, %v1466_v37  ;;  %v1465_v48 = vld [vmem:[#allocation11 + $0x120] sm:$0xff]  ;;  %v1476_v58 = vld [vmem:[#allocation11 + $0x178] sm:$0xff] }
 0x3f3   :  { %3446 = vpow2.f32 %v1334_v34  ;;  %3109 = vmatprep.subr.bf16.mxu1 %v3108_v21  ;;  %v1448_v34 = vld [vmem:[#allocation11 + $0x98] sm:$0xff]  ;;  %v3130_v54 = vpack.c.bf16 %v1468_v41, %v1465_v48  ;;  %v1636_v48 = vld [vmem:[#allocation13 + $0x8] sm:$0xff]  ;;  %v1639_v41 = vld [vmem:[#allocation13 + $0x20] sm:$0xff] }
 0x3f4   :  { %v1635_v8 = vld [vmem:[#allocation13] sm:$0xff] }
 0x3f6   :  { %3111 = vmatpush1.bf16.msra.mxu1 %v3110_v15  ;;  %v1431_v15 = vld [vmem:[#allocation11 + $0x10] sm:$0xff] }
 0x3f7   :  { %3113 = vmatprep.subr.bf16.mxu1 %v3112_v5  ;;  %v3137_v20 = vpack.c.bf16 %v1434_v22, %v1431_v15  ;;  %v1645_v15 = vld [vmem:[#allocation13 + $0x50] sm:$0xff] }
 0x3fa   :  { %3115 = vmatpush1.bf16.msra.mxu1 %v3114_v19  ;;  %v1437_v19 = vld [vmem:[#allocation11 + $0x40] sm:$0xff] }
 0x3fc   :  { %v3445_v63 = vpop.eup %3444 }
 0x3fd   :  { %v3447_v24 = vpop.eup %3446  ;;  %v1336_v50 = vrot.slane %v3445_v63, 4 }
 0x3fe   :  { %v1342_v49 = vrot.slane %v3447_v24, 4 }
 0x3ff   :  { %v1337_v47 = vadd.f32 %v3445_v63, %v1336_v50  ;;  %v1447_v50 = vld [vmem:[#allocation11 + $0x90] sm:$0xff] }
 0x400   :  { %v1343_v31 = vadd.f32 %v3447_v24, %v1342_v49  ;;  %v1450_v49 = vld [vmem:[#allocation11 + $0xa8] sm:$0xff] }
 0x401   :  { %v1338_v33 = vrot.slane %v1337_v47, 2 }
 0x402   :  { %v1344_v26 = vrot.slane %v1343_v31, 2 }
 0x403   :  { %v1339_v45 = vadd.f32 %v1338_v33, %v1337_v47  ;;  %v3118_v47 = vpack.c.bf16 %v1450_v49, %v1447_v50  ;;  %v1457_v33 = vld [vmem:[#allocation11 + $0xe0] sm:$0xff]  ;;  %v1446_v50 = vld [vmem:[#allocation11 + $0x88] sm:$0xff] }
 0x404   :  { %v1345_v38 = vadd.f32 %v1344_v26, %v1343_v31  ;;  %v1454_v31 = vld [vmem:[#allocation11 + $0xc8] sm:$0xff] }
 0x405   :  { %v1340_v39 = vrot.slane %v1339_v45, 1  ;;  %v3120_v26 = vpack.c.bf16 %v1457_v33, %v1454_v31  ;;  %v1455_v31 = vld [vmem:[#allocation11 + $0xd0] sm:$0xff]  ;;  %v1458_v33 = vld [vmem:[#allocation11 + $0xe8] sm:$0xff] }
 0x406   :  { %v1346_v32 = vrot.slane %v1345_v38, 1 }
 0x407   :  { %v1341_v40 = vadd.f32 %v1340_v39, %v1339_v45  ;;  %v1453_v45 = vld [vmem:[#allocation11 + $0xc0] sm:$0xff] }
 0x408   :  { %v1347_v12 = vadd.f32 %v1346_v32, %v1345_v38  ;;  %v1456_v38 = vld [vmem:[#allocation11 + $0xd8] sm:$0xff] }
 0x409   :  { %3448 = vrcp.f32 %v1341_v40  ;;  %v3122_v39 = vpack.c.bf16 %v1456_v38, %v1453_v45  ;;  %v1460_v32 = vld [vmem:[#allocation11 + $0xf8] sm:$0xff]  ;;  %v1463_v40 = vld [vmem:[#allocation11 + $0x110] sm:$0xff]  ;;  %v1461_v45 = vld [vmem:[#allocation11 + $0x100] sm:$0xff] }
 0x40a   :  { %3450 = vrcp.f32 %v1347_v12  ;;  %v3124_v12 = vpack.c.bf16 %v1463_v40, %v1460_v32  ;;  %v1464_v38 = vld [vmem:[#allocation11 + $0x118] sm:$0xff]  ;;  %v1467_v32 = vld [vmem:[#allocation11 + $0x130] sm:$0xff]  ;;  %v1470_v40 = vld [vmem:[#allocation11 + $0x148] sm:$0xff] }
 0x413   :  { %v3449_v35 = vpop.eup %3448 }
 0x414   :  { %v3451_v10 = vpop.eup %3450  ;;  %v4568_v29 = vmul.f32 %v3449_v35, %v3445_v63  ;;  %v1451_v63 = vld [vmem:[#allocation11 + $0xb0] sm:$0xff] }
 0x415   :  { %v4570_v42 = vmul.f32 %v3451_v10, %v3447_v24  ;;  %v3116_v24 = vpack.c.bf16 %v1451_v63, %v1448_v34  ;;  %v1459_v35 = vld [vmem:[#allocation11 + $0xf0] sm:$0xff]  ;;  %v1462_v10 = vld [vmem:[#allocation11 + $0x108] sm:$0xff]  ;;  %v1440_v34 = vld [vmem:[#allocation11 + $0x58] sm:$0xff] }
 0x416   :  { %v3140_v63 = vpack.c.bf16 %v1440_v34, %v1437_v19 }
 0x417   :  { %v1352_v46 = vadd.f32 %v4570_v42, %v4568_v29  ;;  %3117 = vmatprep.subr.bf16.mxu1 %v3116_v24  ;;  %v1443_v24 = vld [vmem:[#allocation11 + $0x70] sm:$0xff] }
 0x418   :  { %3119 = vmatpush1.bf16.msra.mxu1 %v3118_v47  ;;  %v3143_v49 = vpack.c.bf16 %v1446_v50, %v1443_v24  ;;  %v1643_v24 = vld [vmem:[#allocation13 + $0x40] sm:$0xff]  ;;  %v1646_v50 = vld [vmem:[#allocation13 + $0x58] sm:$0xff] }
 0x419   :  { %1353 = vadd.xlane.f32.xlu0 %v1352_v46  ;;  %3121 = vmatprep.subr.bf16.mxu1 %v3120_v26  ;;  %v3126_v46 = vpack.c.bf16 %v1462_v10, %v1459_v35  ;;  %v3149_v26 = vpack.c.bf16 %v1458_v33, %v1455_v31  ;;  %v1471_v35 = vld [vmem:[#allocation11 + $0x150] sm:$0xff]  ;;  %v1474_v10 = vld [vmem:[#allocation11 + $0x168] sm:$0xff]  ;;  %v1647_v31 = vld [vmem:[#allocation13 + $0x60] sm:$0xff] }
 0x41a   :  { %v3134_v37 = vpack.c.bf16 %v1474_v10, %v1471_v35  ;;  %v1653_v35 = vld [vmem:[#allocation13 + $0x90] sm:$0xff] }
 0x41c   :  { %3123 = vmatpush1.bf16.msra.mxu1 %v3122_v39  ;;  %v3152_v39 = vpack.c.bf16 %v1464_v38, %v1461_v45  ;;  %v1649_v45 = vld [vmem:[#allocation13 + $0x70] sm:$0xff]  ;;  %v1652_v38 = vld [vmem:[#allocation13 + $0x88] sm:$0xff] }
 0x41d   :  { %3125 = vmatprep.subr.bf16.mxu1 %v3124_v12  ;;  %v3155_v12 = vpack.c.bf16 %v1470_v40, %v1467_v32  ;;  %v1657_v32 = vld [vmem:[#allocation13 + $0xb0] sm:$0xff] }
 0x420   :  { %3127 = vmatpush1.bf16.msra.mxu1 %v3126_v46  ;;  %v1473_v46 = vld [vmem:[#allocation11 + $0x160] sm:$0xff] }
 0x421   :  { %3129 = vmatprep.subr.bf16.mxu1 %v3128_v0  ;;  %v3158_v0 = vpack.c.bf16 %v1476_v58, %v1473_v46  ;;  %v1656_v46 = vld [vmem:[#allocation13 + $0xa8] sm:$0xff]  ;;  %v1658_v58 = vld [vmem:[#allocation13 + $0xb8] sm:$0xff] }
 0x424   :  { %3131 = vmatpush1.bf16.msra.mxu1 %v3130_v54  ;;  %v3160_v54 = vpack.c.bf16 %v1639_v41, %v1636_v48  ;;  %v1663_v48 = vld [vmem:[#allocation13 + $0xe0] sm:$0xff]  ;;  %v3174_v41 = vpack.c.bf16 %v1656_v46, %v1653_v35  ;;  %v1680_v35 = vld [vmem:[#allocation13 + $0x168] sm:$0xff]  ;;  %v1682_v46 = vld [vmem:[#allocation13 + $0x178] sm:$0xff] }
 0x425   :  { %3133 = vmatprep.subr.bf16.mxu1 %v3132_v51  ;;  %v1637_v51 = vld [vmem:[#allocation13 + $0x10] sm:$0xff] }
 0x428   :  { %3135 = vmatpush1.bf16.msra.mxu1 %v3134_v37  ;;  %v1655_v37 = vld [vmem:[#allocation13 + $0xa0] sm:$0xff] }
 0x429   :  { %3161 = vmatprep.subr.bf16.mxu1 %v3160_v54  ;;  %v3202_v54 = vpack.c.bf16 %v1658_v58, %v1655_v37  ;;  %v2022_v37 = vld [vmem:[#allocation16 + $0x80] sm:$0xff]  ;;  %v2023_v58 = vld [vmem:[#allocation16 + $0x88] sm:$0xff] }
 0x4a6   :  { %v1354_v21 = vpop.xlane.xlu0 %1353 }
 0x4a7   :  { %v1355_v43 = vadd.f32 1.0, %v1354_v21  ;;  %v1640_v21 = vld [vmem:[#allocation13 + $0x28] sm:$0xff] }
 0x4a9   :  { %3452 = vrcp.f32 %v1355_v43  ;;  %v1642_v43 = vld [vmem:[#allocation13 + $0x38] sm:$0xff] }
 0x4aa   :  { %v3164_v34 = vpack.c.bf16 %v1645_v15, %v1642_v43  ;;  %v1664_v43 = vld [vmem:[#allocation13 + $0xe8] sm:$0xff]  ;;  %v1666_v15 = vld [vmem:[#allocation13 + $0xf8] sm:$0xff] }
 0x4b3   :  { %v3453_v56 = vpop.eup %3452 }
 0x4b4   :  { %v1358_v5 = vmul.f32 %v3453_v56, %v4570_v42  ;;  %v1357_v59 = vmul.f32 %v3453_v56, %v4568_v29  ;;  %v1449_v42 = vld [vmem:[#allocation11 + $0xa0] sm:$0xff]  ;;  %v1452_v29 = vld [vmem:[#allocation11 + $0xb8] sm:$0xff] }
 0x4b5   :  { %v3146_v47 = vpack.c.bf16 %v1452_v29, %v1449_v42  ;;  %v1651_v42 = vld [vmem:[#allocation13 + $0x80] sm:$0xff] }
 0x4b6   :  { %1423 = vmatprep.mubr.f32.mxu0 %v1358_v5  ;;  %v3162_v5 = vpack.c.bf16 %v1638_v2, %v1635_v8  ;;  %v1659_v8 = vld [vmem:[#allocation13 + $0xc0] sm:$0xff] }
 0x4b7   :  { %1424 = vmatmul.mubr.f32.vlgmr.msra.gmra.mrb[18].mxu0 %v1357_v59  ;;  %v3193_v59 = vpack.c.bf16 %v1640_v21, %v1637_v51  ;;  %v1662_v51 = vld [vmem:[#allocation13 + $0xd8] sm:$0xff]  ;;  %v1661_v21 = vld [vmem:[#allocation13 + $0xd0] sm:$0xff] }
 0x4b8   :  { %3138 = vmatpush3.bf16.msra.mxu0 %v3137_v20  ;;  %2879 = vmatprep.mubr.msk.f32.mxu0 %vm3751_vm0, %v3752_v28  ;;  %v1641_v20 = vld [vmem:[#allocation13 + $0x30] sm:$0xff] }
 0x4b9   :  { %3139 = vmatprep.subr.bf16.mxu0 %v3750_v14 }
 0x4bc   :  { %3141 = vmatpush3.bf16.msra.mxu0 %v3140_v63  ;;  %v1644_v63 = vld [vmem:[#allocation13 + $0x48] sm:$0xff] }
 0x4bd   :  { %3142 = vmatprep.subr.bf16.mxu0 %v3750_v14  ;;  %v3166_v29 = vpack.c.bf16 %v1644_v63, %v1641_v20  ;;  %v1670_v63 = vld [vmem:[#allocation13 + $0x118] sm:$0xff] }
 0x4c0   :  { %3144 = vmatpush3.bf16.msra.mxu0 %v3143_v49  ;;  %v1648_v49 = vld [vmem:[#allocation13 + $0x68] sm:$0xff] }
 0x4c1   :  { %3145 = vmatprep.subr.bf16.mxu0 %v3750_v14  ;;  %v3168_v33 = vpack.c.bf16 %v1651_v42, %v1648_v49 }
 0x4c4   :  { %3147 = vmatpush3.bf16.msra.mxu0 %v3146_v47  ;;  %v3196_v47 = vpack.c.bf16 %v1646_v50, %v1643_v24  ;;  %v1672_v24 = vld [vmem:[#allocation13 + $0x128] sm:$0xff]  ;;  %v1675_v50 = vld [vmem:[#allocation13 + $0x140] sm:$0xff] }
 0x4c5   :  { %3148 = vmatprep.subr.bf16.mxu0 %v3750_v14 }
 0x4c8   :  { %3150 = vmatpush3.bf16.msra.mxu0 %v3149_v26  ;;  %v1650_v26 = vld [vmem:[#allocation13 + $0x78] sm:$0xff] }
 0x4c9   :  { %3151 = vmatprep.subr.bf16.mxu0 %v3750_v14  ;;  %v3170_v40 = vpack.c.bf16 %v1650_v26, %v1647_v31  ;;  %v1674_v31 = vld [vmem:[#allocation13 + $0x138] sm:$0xff]  ;;  %v1676_v26 = vld [vmem:[#allocation13 + $0x148] sm:$0xff] }
 0x4cc   :  { %3153 = vmatpush3.bf16.msra.mxu0 %v3152_v39  ;;  %v1654_v39 = vld [vmem:[#allocation13 + $0x98] sm:$0xff] }
 0x4cd   :  { %3154 = vmatprep.subr.bf16.mxu0 %v3750_v14  ;;  %v3172_v10 = vpack.c.bf16 %v1657_v32, %v1654_v39 }
 0x4d0   :  { %3156 = vmatpush3.bf16.msra.mxu0 %v3155_v12  ;;  %v3199_v12 = vpack.c.bf16 %v1652_v38, %v1649_v45  ;;  %v1678_v45 = vld [vmem:[#allocation13 + $0x158] sm:$0xff]  ;;  %v1681_v38 = vld [vmem:[#allocation13 + $0x170] sm:$0xff] }
 0x4d1   :  { %3157 = vmatprep.subr.bf16.mxu0 %v3750_v14 }
 0x4d4   :  { %3159 = vmatpush3.bf16.msra.mxu0 %v3158_v0  ;;  %v1660_v0 = vld [vmem:[#allocation13 + $0xc8] sm:$0xff] }
 0x4d5   :  { %3192 = vmatprep.subr.bf16.mxu0 %v3750_v14  ;;  %v3176_v2 = vpack.c.bf16 %v1663_v48, %v1660_v0 }
 0x58a   :  { %v2529_v22 = vpop.f32.mrb[18].mxu0 }
 0x58b   :  { %v2530_v56 = vpop.f32.mrb[19].mxu0 }
 0x58c   :  { %v2531_v19 = vadd.f32 %v2530_v56, %v2529_v22  ;;  %v1669_v22 = vld [vmem:[#allocation13 + $0x110] sm:$0xff]  ;;  %v3178_v56 = vpack.c.bf16 %v1662_v51, %v1659_v8  ;;  %v2007_v8 = vld [vmem:[#allocation16 + $0x8] sm:$0xff]  ;;  %v2025_v51 = vld [vmem:[#allocation16 + $0x98] sm:$0xff] }
 0x58d   :  { %v3180_v20 = vpack.c.bf16 %v1669_v22, %v1666_v15  ;;  %v2008_v15 = vld [vmem:[#allocation16 + $0x10] sm:$0xff]  ;;  %v2009_v22 = vld [vmem:[#allocation16 + $0x18] sm:$0xff] }
 0x58e   :  { %1559 = vmatmul.mubr.f32.vlgmr.msra.gmra.mrb[50].mxu1 %v2531_v19  ;;  %2880 = vmatmul.mubr.f32.vlgmr.msra.gmra.mrb[20].mxu0 %v2531_v19  ;;  %v1668_v19 = vld [vmem:[#allocation13 + $0x108] sm:$0xff] }
 0x58f   :  { %3163 = vmatpush1.bf16.msra.mxu1 %v3162_v5  ;;  %3194 = vmatpush3.bf16.msra.mxu0 %v3193_v59  ;;  %v3205_v5 = vpack.c.bf16 %v1664_v43, %v1661_v21  ;;  %v1665_v59 = vld [vmem:[#allocation13 + $0xf0] sm:$0xff] }
 0x590   :  { %3165 = vmatprep.subr.bf16.mxu1 %v3164_v34  ;;  %3195 = vmatprep.subr.bf16.mxu0 %v3750_v14  ;;  %v1667_v34 = vld [vmem:[#allocation13 + $0x100] sm:$0xff]  ;;  %v3182_v49 = vpack.c.bf16 %v1668_v19, %v1665_v59  ;;  %v4596_v59 = vld [vmem:[#allocation5] sm:$0xff] }
 0x591   :  { %1764 = vmatprep.mubr.f32.mxu1 %v3752_v28  ;;  %2914 = vmatprep.mubr.msk.f32.mxu0 %vm3751_vm0, %v3752_v28  ;;  %v3208_v42 = vpack.c.bf16 %v1670_v63, %v1667_v34  ;;  %v2010_v34 = vld [vmem:[#allocation16 + $0x20] sm:$0xff]  ;;  %v2011_v63 = vld [vmem:[#allocation16 + $0x28] sm:$0xff] }
 0x593   :  { %3167 = vmatpush1.bf16.msra.mxu1 %v3166_v29  ;;  %3197 = vmatpush3.bf16.msra.mxu0 %v3196_v47  ;;  %v1671_v29 = vld [vmem:[#allocation13 + $0x120] sm:$0xff]  ;;  %v3184_v47 = vpack.c.bf16 %v1675_v50, %v1672_v24  ;;  %v2028_v24 = vld [vmem:[#allocation16 + $0xb0] sm:$0xff]  ;;  %v2029_v50 = vld [vmem:[#allocation16 + $0xb8] sm:$0xff] }
 0x594   :  { %3169 = vmatprep.subr.bf16.mxu1 %v3168_v33  ;;  %3198 = vmatprep.subr.bf16.mxu0 %v3750_v14  ;;  %v1673_v33 = vld [vmem:[#allocation13 + $0x130] sm:$0xff]  ;;  %v3186_v39 = vpack.c.bf16 %v1674_v31, %v1671_v29  ;;  %v2030_v31 = vld [vmem:[#allocation16 + $0xc0] sm:$0xff] }
 0x595   :  { %v3211_v32 = vpack.c.bf16 %v1676_v26, %v1673_v33  ;;  %v2012_v29 = vld [vmem:[#allocation16 + $0x30] sm:$0xff]  ;;  %v2031_v33 = vld [vmem:[#allocation16 + $0xc8] sm:$0xff] }
 0x597   :  { %3171 = vmatpush1.bf16.msra.mxu1 %v3170_v40  ;;  %3200 = vmatpush3.bf16.msra.mxu0 %v3199_v12  ;;  %v1677_v40 = vld [vmem:[#allocation13 + $0x150] sm:$0xff]  ;;  %v3188_v12 = vpack.c.bf16 %v1681_v38, %v1678_v45  ;;  %v3264_v45 = vpack.c.bf16 %v2031_v33, %v2030_v31  ;;  %v2014_v38 = vld [vmem:[#allocation16 + $0x40] sm:$0xff] }
 0x598   :  { %3173 = vmatprep.subr.bf16.mxu1 %v3172_v10  ;;  %3201 = vmatprep.subr.bf16.mxu0 %v3750_v14  ;;  %v1679_v10 = vld [vmem:[#allocation13 + $0x160] sm:$0xff]  ;;  %v3190_v0 = vpack.c.bf16 %v1680_v35, %v1677_v40  ;;  %v2033_v40 = vld [vmem:[#allocation16 + $0xd8] sm:$0xff] }
 0x599   :  { %v3214_v48 = vpack.c.bf16 %v1682_v46, %v1679_v10  ;;  %v2016_v10 = vld [vmem:[#allocation16 + $0x50] sm:$0xff]  ;;  %v2017_v46 = vld [vmem:[#allocation16 + $0x58] sm:$0xff] }
 0x59b   :  { %3175 = vmatpush1.bf16.msra.mxu1 %v3174_v41  ;;  %3203 = vmatpush3.bf16.msra.mxu0 %v3202_v54  ;;  %v3248_v41 = vpack.c.bf16 %v2023_v58, %v2022_v37  ;;  %v2006_v54 = vld [vmem:[#allocation16] sm:$0xff]  ;;  %v2035_v58 = vld [vmem:[#allocation16 + $0xe8] sm:$0xff] }
 0x59c   :  { %3177 = vmatprep.subr.bf16.mxu1 %v3176_v2  ;;  %3204 = vmatprep.subr.bf16.mxu0 %v3750_v14  ;;  %v2024_v2 = vld [vmem:[#allocation16 + $0x90] sm:$0xff]  ;;  %v3250_v21 = vpack.c.bf16 %v2007_v8, %v2006_v54  ;;  %v2034_v37 = vld [vmem:[#allocation16 + $0xe0] sm:$0xff]  ;;  %v2019_v54 = vld [vmem:[#allocation16 + $0x68] sm:$0xff] }
 0x59d   :  { %v3252_v43 = vpack.c.bf16 %v2025_v51, %v2024_v2  ;;  %v2036_v8 = vld [vmem:[#allocation16 + $0xf0] sm:$0xff]  ;;  %v2037_v2 = vld [vmem:[#allocation16 + $0xf8] sm:$0xff] }
 0x59f   :  { %3179 = vmatpush1.bf16.msra.mxu1 %v3178_v56  ;;  %3206 = vmatpush3.bf16.msra.mxu0 %v3205_v5  ;;  %v2026_v56 = vld [vmem:[#allocation16 + $0xa0] sm:$0xff]  ;;  %v2027_v5 = vld [vmem:[#allocation16 + $0xa8] sm:$0xff] }
 0x5a0   :  { %3181 = vmatprep.subr.bf16.mxu1 %v3180_v20  ;;  %3207 = vmatprep.subr.bf16.mxu0 %v3750_v14  ;;  %v3254_v20 = vpack.c.bf16 %v2009_v22, %v2008_v15  ;;  %v3256_v19 = vpack.c.bf16 %v2027_v5, %v2026_v56  ;;  %v2021_v15 = vld [vmem:[#allocation16 + $0x78] sm:$0xff] }
 0x5a3   :  { %3183 = vmatpush1.bf16.msra.mxu1 %v3182_v49  ;;  %3209 = vmatpush3.bf16.msra.mxu0 %v3208_v42  ;;  %v3258_v49 = vpack.c.bf16 %v2011_v63, %v2010_v34  ;;  %v3260_v42 = vpack.c.bf16 %v2029_v50, %v2028_v24  ;;  %v1683_v63 = vld [vmem:[%s4713_s14] sm:$0x7] }
 0x5a4   :  { %3185 = vmatprep.subr.bf16.mxu1 %v3184_v47  ;;  %3210 = vmatprep.subr.bf16.mxu0 %v3750_v14  ;;  %v2013_v47 = vld [vmem:[#allocation16 + $0x38] sm:$0xff] }
 0x5a5   :  { %v3262_v26 = vpack.c.bf16 %v2013_v47, %v2012_v29  ;;  %v1477_v50 = vld [vmem:[%s4712_s13] sm:$0x7] }
 0x5a7   :  { %3187 = vmatpush1.bf16.msra.mxu1 %v3186_v39  ;;  %3212 = vmatpush3.bf16.msra.mxu0 %v3211_v32  ;;  %v2015_v39 = vld [vmem:[#allocation16 + $0x48] sm:$0xff]  ;;  %v2032_v32 = vld [vmem:[#allocation16 + $0xd0] sm:$0xff] }
 0x5a8   :  { %3189 = vmatprep.subr.bf16.mxu1 %v3188_v12  ;;  %3213 = vmatprep.subr.bf16.mxu0 %v3750_v14  ;;  %v3266_v12 = vpack.c.bf16 %v2015_v39, %v2014_v38  ;;  %v3268_v35 = vpack.c.bf16 %v2033_v40, %v2032_v32 }
 0x5ab   :  { %3191 = vmatpush1.bf16.msra.mxu1 %v3190_v0  ;;  %3215 = vmatpush3.bf16.msra.mxu0 %v3214_v48  ;;  %v3270_v0 = vpack.c.bf16 %v2017_v46, %v2016_v10  ;;  %v3272_v48 = vpack.c.bf16 %v2035_v58, %v2034_v37 }
 0x5ac   :  { %3249 = vmatprep.subr.bf16.mxu0 %v3248_v41  ;;  %v2018_v41 = vld [vmem:[#allocation16 + $0x60] sm:$0xff] }
 0x5ad   :  { %v3274_v51 = vpack.c.bf16 %v2019_v54, %v2018_v41 }
 0x5ae   :  { %1765 = vmatmul.mubr.f32.vlgmr.msra.gmra.mrb[50].mxu1 %v4596_v59  ;;  %2915 = vmatmul.mubr.f32.vlgmr.msra.gmra.mrb[22].mxu0 %v4596_v59 }
 0x5af   :  { %3251 = vmatpush3.bf16.msra.mxu0 %v3250_v21  ;;  %1997 = vmatprep.mubr.f32.mxu1 %v3752_v28  ;;  %v3276_v21 = vpack.c.bf16 %v2037_v2, %v2036_v8 }
 0x5b0   :  { %3253 = vmatprep.subr.bf16.mxu0 %v3252_v43  ;;  %v2020_v43 = vld [vmem:[#allocation16 + $0x70] sm:$0xff] }
 0x5b1   :  { %v3278_v22 = vpack.c.bf16 %v2021_v15, %v2020_v43 }
 0x5b3   :  { %3255 = vmatpush3.bf16.msra.mxu0 %v3254_v20  ;;  %v1479_v20 = vlaneseq }
 0x5b4   :  { %3257 = vmatprep.subr.bf16.mxu0 %v3256_v19 }
 0x5b5   :  { %v1480_v19 = vshrl.u32 %v1479_v20, 7 }
 0x5b7   :  { %3259 = vmatpush3.bf16.msra.mxu0 %v3258_v49  ;;  %v4602_v34 = vsub.s32 0, %v1480_v19  ;;  %v4607_v24 = vsub.s32 1, %v1480_v19  ;;  %v1489_v58 = vsub.s32 2, %v1480_v19  ;;  %v1890_v19 = vld [vmem:[#allocation14 + $0x8] sm:$0xff] }
 0x5b8   :  { %3261 = vmatprep.subr.bf16.mxu0 %v3260_v42 }
 0x5b9   :  { %v1482_v49 = vrot.slane %v1477_v50, %v4602_v34  ;;  %v1486_v42 = vrot.slane %v1477_v50, %v4607_v24  ;;  %v1692_v29 = vrot.slane %v1683_v63, %v4607_v24  ;;  %v1490_v41 = vrot.slane %v1477_v50, %v1489_v58  ;;  %v1889_v50 = vld [vmem:[#allocation14] sm:$0xff] }
 0x5bb   :  { %3263 = vmatpush3.bf16.msra.mxu0 %v3262_v26  ;;  %v3354_v31 = vadd.f32 %v1692_v29, %v1486_v42  ;;  %v1891_v29 = vld [vmem:[#allocation14 + $0x10] sm:$0xff] }
 0x5bc   :  { %3265 = vmatprep.subr.bf16.mxu0 %v3264_v45 }
 0x5bf   :  { %3267 = vmatpush3.bf16.msra.mxu0 %v3266_v12 }
 0x5c0   :  { %3269 = vmatprep.subr.bf16.mxu0 %v3268_v35 }
 0x5c3   :  { %3271 = vmatpush3.bf16.msra.mxu0 %v3270_v0  ;;  %v1696_v0 = vrot.slane %v1683_v63, %v1489_v58 }
 0x5c4   :  { %3273 = vmatprep.subr.bf16.mxu0 %v3272_v48 }
 0x5c7   :  { %3275 = vmatpush3.bf16.msra.mxu0 %v3274_v51 }
 0x5c8   :  { %3277 = vmatprep.subr.bf16.mxu0 %v3276_v21 }
 0x5cb   :  { %3279 = vmatpush3.bf16.msra.mxu0 %v3278_v22 }
 0x5cc   :  { %3305 = vmatprep.subr.bf16.mxu0 %v4518_v53  ;;  %v1688_v53 = vrot.slane %v1683_v63, %v4602_v34  ;;  %v1892_v63 = vld [vmem:[#allocation14 + $0x18] sm:$0xff] }
 0x5cd   :  { %v3216_v42 = vpack.c.bf16 %v1892_v63, %v1890_v19  ;;  %v1909_v19 = vld [vmem:[#allocation14 + $0xa0] sm:$0xff] }
 0x5ce   :  { %v3352_v47 = vadd.f32 %v1688_v53, %v1482_v49 }
 0x5cf   :  { %3217 = vmatprep.subr.bf16.mxu1 %v3216_v42  ;;  %v1914_v42 = vld [vmem:[#allocation14 + $0xc8] sm:$0xff] }
 0x661   :  { %v1631_v56 = vpop.f32.mrb[20].mxu0 }
 0x662   :  { %v2881_v5 = vpop.f32.mrb[21].mxu0  ;;  %v1632_v51 = vadd.f32 %v1631_v56, %v1490_v41  ;;  %v1894_v56 = vld [vmem:[#allocation14 + $0x28] sm:$0xff] }
 0x681   :  { %v1766_v33 = vpop.f32.mrb[50].mxu1  ;;  %v1837_v26 = vpop.f32.mrb[22].mxu0 }
 0x682   :  { %v3353_v45 = vadd.f32 %v3352_v47, %v1766_v33  ;;  %v1768_v38 = vpop.f32.mrb[51].mxu1  ;;  %v2916_v39 = vpop.f32.mrb[23].mxu0  ;;  %v1838_v8 = vadd.f32 %v1837_v26, %v1696_v0  ;;  %v1896_v47 = vld [vmem:[#allocation14 + $0x38] sm:$0xff]  ;;  %v1893_v26 = vld [vmem:[#allocation14 + $0x20] sm:$0xff]  ;;  %v1902_v0 = vld [vmem:[#allocation14 + $0x68] sm:$0xff] }
 0x683   :  { %v3355_v32 = vadd.f32 %v3354_v31, %v1768_v38  ;;  %v3218_v31 = vpack.c.bf16 %v1891_v29, %v1889_v50  ;;  %v3220_v33 = vpack.c.bf16 %v1896_v47, %v1894_v56  ;;  %v1898_v38 = vld [vmem:[#allocation14 + $0x48] sm:$0xff]  ;;  %v1900_v39 = vld [vmem:[#allocation14 + $0x58] sm:$0xff]  ;;  %v1911_v50 = vld [vmem:[#allocation14 + $0xb0] sm:$0xff] }
 0x684   :  { %v1842_v40 = vsub.f32 0.0, %v3353_v45  ;;  %v1895_v45 = vld [vmem:[#allocation14 + $0x30] sm:$0xff]  ;;  %v1916_v29 = vld [vmem:[#allocation14 + $0xd8] sm:$0xff]  ;;  %v3238_v56 = vpack.c.bf16 %v1911_v50, %v1909_v19 }
 0x685   :  { %v1849_v35 = vsub.f32 0.0, %v3355_v32  ;;  %3219 = vmatpush1.bf16.msra.mxu1 %v3218_v31  ;;  %v3224_v32 = vpack.c.bf16 %v1900_v39, %v1898_v38  ;;  %v3240_v47 = vpack.c.bf16 %v1916_v29, %v1914_v42  ;;  %v1913_v31 = vld [vmem:[#allocation14 + $0xc0] sm:$0xff] }
 0x686   :  { %v1843_v12 = vmul.f32 1.442695, %v1842_v40  ;;  %3221 = vmatprep.subr.bf16.mxu1 %v3220_v33  ;;  %v1897_v40 = vld [vmem:[#allocation14 + $0x40] sm:$0xff]  ;;  %v1915_v33 = vld [vmem:[#allocation14 + $0xd0] sm:$0xff] }
 0x687   :  { %v1850_v10 = vmul.f32 1.442695, %v1849_v35  ;;  %v3242_v38 = vpack.c.bf16 %v1915_v33, %v1913_v31 }
 0x688   :  { %3454 = vpow2.f32 %v1843_v12  ;;  %v1899_v12 = vld [vmem:[#allocation14 + $0x50] sm:$0xff] }
 0x689   :  { %3456 = vpow2.f32 %v1850_v10  ;;  %v3226_v35 = vpack.c.bf16 %v1899_v12, %v1897_v40 }
 0x692   :  { %v3455_v46 = vpop.eup %3454 }
 0x693   :  { %v1845_v37 = vadd.f32 1.0, %v3455_v46  ;;  %v3457_v48 = vpop.eup %3456 }
 0x694   :  { %v1852_v54 = vadd.f32 1.0, %v3457_v48  ;;  %v1904_v48 = vld [vmem:[#allocation14 + $0x78] sm:$0xff] }
 0x695   :  { %3458 = vrcp.f32 %v1845_v37  ;;  %v3228_v41 = vpack.c.bf16 %v1904_v48, %v1902_v0  ;;  %v2348_v48 = vld [vmem:[%s4706_s7] ss:$0 sm:$0xff] }
 0x696   :  { %3460 = vrcp.f32 %v1852_v54  ;;  %v1901_v54 = vld [vmem:[#allocation14 + $0x60] sm:$0xff] }
 0x69f   :  { %v3459_v2 = vpop.eup %3458 }
 0x6a0   :  { %v1855_v21 = vmul.f32 %v3459_v2, %v1838_v8  ;;  %v3461_v15 = vpop.eup %3460  ;;  %v1903_v8 = vld [vmem:[#allocation14 + $0x70] sm:$0xff] }
 0x6a1   :  { %v1858_v22 = vsub.f32 1.0, %v3461_v15  ;;  %v1860_v49 = vmul.f32 %v4596_v59, %v3461_v15  ;;  %v3222_v59 = vpack.c.bf16 %v1895_v45, %v1893_v26  ;;  %v3230_v2 = vpack.c.bf16 %v1903_v8, %v1901_v54  ;;  %v1905_v15 = vld [vmem:[#allocation14 + $0x80] sm:$0xff]  ;;  %v1918_v26 = vld [vmem:[#allocation14 + $0xe8] sm:$0xff]  ;;  %v1920_v45 = vld [vmem:[#allocation14 + $0xf8] sm:$0xff] }
 0x6a2   :  { %v1856_v43 = vadd.f32 %v1855_v21, %v1632_v51  ;;  %v1906_v51 = vld [vmem:[#allocation14 + $0x88] sm:$0xff]  ;;  %v1908_v21 = vld [vmem:[#allocation14 + $0x98] sm:$0xff]  ;;  %v3244_v39 = vpack.c.bf16 %v1920_v45, %v1918_v26 }
 0x6a3   :  { %3223 = vmatpush1.bf16.msra.mxu1 %v3222_v59  ;;  %v1917_v59 = vld [vmem:[#allocation14 + $0xe0] sm:$0xff] }
 0x6a4   :  { %3462 = vtanh.f32 %v1856_v43  ;;  %3225 = vmatprep.subr.bf16.mxu1 %v3224_v32  ;;  %v3232_v43 = vpack.c.bf16 %v1908_v21, %v1906_v51  ;;  %v1919_v32 = vld [vmem:[#allocation14 + $0xf0] sm:$0xff] }
 0x6a5   :  { %v3246_v40 = vpack.c.bf16 %v1919_v32, %v1917_v59 }
 0x6a7   :  { %3227 = vmatpush1.bf16.msra.mxu1 %v3226_v35 }
 0x6a8   :  { %3229 = vmatprep.subr.bf16.mxu1 %v3228_v41 }
 0x6ab   :  { %3231 = vmatpush1.bf16.msra.mxu1 %v3230_v2 }
 0x6ac   :  { %3233 = vmatprep.subr.bf16.mxu1 %v3232_v43 }
 0x6ae   :  { %v3463_v5 = vpop.eup %3462 }
 0x6af   :  { %v1859_v20 = vmul.f32 %v3463_v5, %v1858_v22  ;;  %v1907_v22 = vld [vmem:[#allocation14 + $0x90] sm:$0xff] }
 0x6b0   :  { %v3234_v5 = vpack.c.bf16 %v1907_v22, %v1905_v15 }
 0x6b1   :  { %v4617_v53 = vadd.f32 %v1860_v49, %v1859_v20  ;;  %v1910_v20 = vld [vmem:[#allocation14 + $0xa8] sm:$0xff]  ;;  %v1912_v49 = vld [vmem:[#allocation14 + $0xb8] sm:$0xff] }
 0x6b2   :  { %v3236_v63 = vpack.c.bf16 %v1912_v49, %v1910_v20  ;;  %3235 = vmatpush1.bf16.msra.mxu1 %v3234_v5 }
 0x6b3   :  { %1864 = vadd.xlane.f32.xlu1 %v4617_v53 }
 0x6b4   :  { %3237 = vmatprep.subr.bf16.mxu1 %v3236_v63 }
 0x6b6   :  { %3239 = vmatpush1.bf16.msra.mxu1 %v3238_v56 }
 0x6b7   :  { %3241 = vmatprep.subr.bf16.mxu1 %v3240_v47 }
 0x6ba   :  { %3243 = vmatpush1.bf16.msra.mxu1 %v3242_v38 }
 0x6bb   :  { %3245 = vmatprep.subr.bf16.mxu1 %v3244_v39 }
 0x6be   :  { %3247 = vmatpush1.bf16.msra.mxu1 %v3246_v40 }
 0x6bf   :  { %3280 = vmatprep.subr.bf16.mxu1 %v3750_v14 }
 0x740   :  { %v1865_v10 = vpop.xlane.xlu1 %1864 }
 0x741   :  { %v1866_v46 = vmul.f32 0.0078125, %v1865_v10 }
 0x743   :  { %v1867_v37 = vsub.f32 %v4617_v53, %v1866_v46 }
 0x745   :  { %v1868_v58 = vmul.f32 %v1867_v37, %v1867_v37 }
 0x747   :  { %1869 = vadd.xlane.f32.xlu0 %v1868_v58  ;;  %v2347_v58 = vld [vmem:[%s4705_s6] ss:$0 sm:$0xff] }
 0x7d4   :  { %v1870_v12 = vpop.xlane.xlu0 %1869 }
 0x7d5   :  { %v1871_v35 = vmul.f32 0.0078125, %v1870_v12 }
 0x7d7   :  { %v1872_v10 = vadd.f32 1e-05, %v1871_v35 }
 0x7d9   :  { %3464 = vrsqrt.f32 %v1872_v10 }
 0x7e3   :  { %v3465_v46 = vpop.eup %3464 }
 0x7e4   :  { %v1874_v0 = vmul.f32 %v3465_v46, %v1867_v37 }
 0x7e6   :  { %v1881_v41 = vmul.f32 %v2347_v58, %v1874_v0 }
 0x7e8   :  { %v1888_v54 = vadd.f32 %v2348_v48, %v1881_v41 }
 0x7ea   :  { %1998 = vmatmul.mubr.f32.vlgmr.msra.gmra.mrb[52].mxu1 %v1888_v54 }
 0x7eb   :  { %3282 = vmatpush3.bf16.msra.mxu1 %v4303_v52  ;;  %2949 = vmatprep.mubr.msk.f32.mxu1 %vm3751_vm0, %v3752_v28  ;;  %v1921_v52 = vld [vmem:[%s4715_s16] sm:$0x3] }
 0x7ec   :  { %3283 = vmatprep.subr.bf16.mxu1 %v3750_v14 }
 0x7ef   :  { %3285 = vmatpush3.bf16.msra.mxu1 %v4317_v30  ;;  %v1926_v30 = vrot.slane %v1921_v52, %v4602_v34 }
 0x7f0   :  { %3286 = vmatprep.subr.bf16.mxu1 %v3750_v14 }
 0x7f3   :  { %3288 = vmatpush3.bf16.msra.mxu1 %v4333_v27  ;;  %v1930_v27 = vrot.slane %v1921_v52, %v4607_v24 }
 0x7f4   :  { %3289 = vmatprep.subr.bf16.mxu1 %v3750_v14 }
 0x7f7   :  { %3291 = vmatpush3.bf16.msra.mxu1 %v4349_v6 }
 0x7f8   :  { %3292 = vmatprep.subr.bf16.mxu1 %v3750_v14 }
 0x7fb   :  { %3294 = vmatpush3.bf16.msra.mxu1 %v4365_v57 }
 0x7fc   :  { %3295 = vmatprep.subr.bf16.mxu1 %v3750_v14 }
 0x7ff   :  { %3297 = vmatpush3.bf16.msra.mxu1 %v4381_v11 }
 0x800   :  { %3298 = vmatprep.subr.bf16.mxu1 %v3750_v14 }
 0x803   :  { %3300 = vmatpush3.bf16.msra.mxu1 %v4402_v1 }
 0x804   :  { %3301 = vmatprep.subr.bf16.mxu1 %v3750_v14 }
 0x807   :  { %3303 = vmatpush3.bf16.msra.mxu1 %v4418_v25 }
 0x8bd   :  { %v1999_v6 = vpop.f32.mrb[52].mxu1 }
 0x8be   :  { %v2000_v57 = vadd.f32 %v1999_v6, %v1926_v30  ;;  %v2001_v28 = vpop.f32.mrb[53].mxu1 }
 0x8bf   :  { %v2002_v11 = vadd.f32 %v2001_v28, %v1930_v27 }
 0x8c0   :  { %v2004_v8 = vmax.f32 %v2000_v57, 0.0 }
 0x8c1   :  { %v2005_v37 = vmax.f32 %v2002_v11, 0.0 }
 0x8c3   :  { %2102 = vmatprep.mubr.f32.mxu0 %v2005_v37 }
 0x8c4   :  { %2103 = vmatmul.mubr.f32.vlgmr.msra.gmra.mrb[24].mxu0 %v2004_v8 }
 0x8c5   :  { %3307 = vmatpush3.bf16.xpose.msra.mxu0 %v4521_v4  ;;  %v2349_v4 = vld [vmem:[%s4717_s18] ss:$0 sm:$0xff] }
 0x8c6   :  { %3309 = vmatprep.subr.bf16.mxu0 %v4524_v44 }
 0x8cd   :  { %3311 = vmatpush3.bf16.xpose.msra.mxu0 %v4527_v23 }
 0x8ce   :  { %3313 = vmatprep.subr.bf16.mxu0 %v4530_v7 }
 0x8d5   :  { %3315 = vmatpush3.bf16.xpose.msra.mxu0 %v4533_v36 }
 0x8d6   :  { %3317 = vmatprep.subr.bf16.mxu0 %v4536_v60 }
 0x8dd   :  { %3319 = vmatpush3.bf16.xpose.msra.mxu0 %v4539_v13 }
 0x8de   :  { %3321 = vmatprep.subr.bf16.mxu0 %v4542_v9 }
 0x8e5   :  { %3323 = vmatpush3.bf16.xpose.msra.mxu0 %v4545_v16 }
 0x8e6   :  { %3325 = vmatprep.subr.bf16.mxu0 %v4548_v55 }
 0x8ed   :  { %3327 = vmatpush3.bf16.xpose.msra.mxu0 %v4551_v62 }
 0x8ee   :  { %3329 = vmatprep.subr.bf16.mxu0 %v4554_v18 }
 0x8f5   :  { %3331 = vmatpush3.bf16.xpose.msra.mxu0 %v4557_v3  ;;  %v3477_v3 = vld [vmem:[%s4742_s29] ss:$0 sm:$0xff] }
 0x8f6   :  { %3333 = vmatprep.subr.bf16.mxu0 %v4560_v17 }
 0x8fd   :  { %3335 = vmatpush3.bf16.xpose.msra.mxu0 %v4563_v61  ;;  %v3478_v61 = vld [vmem:[%s4704_s5] ss:$0 sm:$0xff] }
 0x997   :  { %v2598_v14 = vpop.f32.mrb[24].mxu0 }
 0x998   :  { %v2599_v1 = vpop.f32.mrb[25].mxu0 }
 0x999   :  { %v2600_v25 = vadd.f32 %v2599_v1, %v2598_v14 }
 0x99b   :  { %v2108_v44 = vadd.f32 %v2600_v25, %v4617_v53 }
 0x99d   :  { %v2116_v23 = vadd.f32 %v2349_v4, %v2108_v44 }
 0x99f   :  { %2117 = vadd.xlane.f32.xlu1 %v2116_v23  ;;  %2307 = vst [vmem:[#allocation17] sm:$0xff] %v2116_v23 }
 0xa2c   :  { %v2118_v7 = vpop.xlane.xlu1 %2117 }
 0xa2d   :  { %v2119_v36 = vmul.f32 0.0078125, %v2118_v7 }
 0xa2f   :  { %v2120_v60 = vsub.f32 %v2116_v23, %v2119_v36 }
 0xa31   :  { %v2121_v13 = vmul.f32 %v2120_v60, %v2120_v60 }
 0xa33   :  { %2122 = vadd.xlane.f32.xlu0 %v2121_v13 }
 0xac0   :  { %v2123_v9 = vpop.xlane.xlu0 %2122 }
 0xac1   :  { %v2124_v16 = vmul.f32 0.0078125, %v2123_v9 }
 0xac3   :  { %v2125_v55 = vadd.f32 1e-05, %v2124_v16 }
 0xac5   :  { %3466 = vrsqrt.f32 %v2125_v55 }
 0xacf   :  { %v3467_v62 = vpop.eup %3466 }
 0xad0   :  { %v2127_v18 = vmul.f32 %v3467_v62, %v2120_v60 }
 0xad2   :  { %v2128_v17 = vmul.f32 %v3477_v3, %v2127_v18 }
 0xad4   :  { %v2129_v34 = vadd.f32 %v3478_v61, %v2128_v17 }
 0xad6   :  { %2950 = vmatmul.mubr.f32.vlgmr.msra.gmra.mrb[54].mxu1 %v2129_v34 }
 0xba9   :  { %v2196_v24 = vpop.f32.mrb[54].mxu1 }
 0xbaa   :  { %v2951_v53 = vpop.f32.mrb[55].mxu1  ;;  %2650 = vmatprep.mubr.f32.mxu0 %v2196_v24 }
 0xbab   :  { %2651 = vmatmul.mubr.f32.vlgmr.msra.gmra.mrb[26].mxu0 %v2196_v24 }
 0xbac   :  { %3688 = shalt.err (!%p3685_p6)
}
 0xbad   :  { %s3689_s5 = scalar_lea.hbm %s4718_s19, 128 }
 0xbae   :  { %p3690_p7 = scmp.ne.s32.totalorder %s4718_s19, %s3689_s5  ;;  %p3693_p8 = scmp.lt.u32.totalorder %s3689_s5, %s4718_s19 }
 0xbb0   :  { %p3695_p9 = pnand %p3693_p8, %p3690_p7 }
 0xbb2   :  { %3698 = shalt.err (!%p3695_p9)
}
 0xbb3   :  { %2319 = dma.vmem_to_hbm [thread:$0]  %s2317_s17, 128, %s4718_s19, [#allocation4]  }
 0xbb4   :  { %s3754_s19 = smov [#allocation18]  }
 0xbb5   :  { %s2326_s0 = sshll.u32 %s3754_s19, 4  ;;  %s2327_s0 = int_to_ptr.vmem [resolvable:$true] %s2326_s0 }
 0xbb6   :  { %s3699_s25 = scalar_lea.vmem %s2327_s0, 256  ;;  %p3704_p11 = scmp.lt.s32.totalorder %s2327_s0, %s2327_s0 }
 0xbb7   :  { %p3700_p10 = scmp.ne.s32.totalorder %s2327_s0, %s3699_s25  ;;  %p3705_p12 = scmp.lt.s32.totalorder %s3699_s25, %s3699_s25 }
 0xbb9   :  { %p3706_p13 = por %p3705_p12, %p3704_p11 }
 0xbbb   :  { %p3707_p0 = pnand %p3706_p13, %p3700_p10 }
 0xc7e   :  { %v2266_v2 = vpop.f32.mrb[26].mxu0 }
 0xc7f   :  { %v2271_v51 = vmul.f32 0.088388346, %v2266_v2  ;;  %v2268_v21 = vpop.f32.mrb[27].mxu0 }
 0xc80   :  { %v2272_v43 = vmul.f32 0.088388346, %v2268_v21 }
 0xc81   :  { %v2273_v15 = vrot.slane %v2271_v51, 4 }
 0xc82   :  { %v2279_v22 = vrot.slane %v2272_v43, 4 }
 0xc83   :  { %v2274_v5 = vmax.f32 %v2271_v51, %v2273_v15 }
 0xc84   :  { %v2280_v20 = vmax.f32 %v2272_v43, %v2279_v22 }
 0xc85   :  { %v2275_v49 = vrot.slane %v2274_v5, 2 }
 0xc86   :  { %v2281_v19 = vrot.slane %v2280_v20, 2 }
 0xc87   :  { %v2276_v63 = vmax.f32 %v2274_v5, %v2275_v49 }
 0xc88   :  { %v2282_v50 = vmax.f32 %v2280_v20, %v2281_v19 }
 0xc89   :  { %v2277_v42 = vrot.slane %v2276_v63, 1 }
 0xc8a   :  { %v2283_v29 = vrot.slane %v2282_v50, 1 }
 0xc8b   :  { %v2278_v56 = vmax.f32 %v2276_v63, %v2277_v42 }
 0xc8c   :  { %v2284_v47 = vmax.f32 %v2282_v50, %v2283_v29 }
 0xc8d   :  { %v2285_v31 = vsub.f32 %v2271_v51, %v2278_v56 }
 0xc8e   :  { %v2286_v33 = vsub.f32 %v2272_v43, %v2284_v47 }
 0xc8f   :  { %v2287_v26 = vmul.f32 1.442695, %v2285_v31 }
 0xc90   :  { %v2289_v45 = vmul.f32 1.442695, %v2286_v33 }
 0xc91   :  { %3468 = vpow2.f32 %v2287_v26 }
 0xc92   :  { %3470 = vpow2.f32 %v2289_v45 }
 0xc9b   :  { %v3469_v38 = vpop.eup %3468 }
 0xc9c   :  { %v3471_v39 = vpop.eup %3470  ;;  %v2291_v59 = vrot.slane %v3469_v38, 4 }
 0xc9d   :  { %v2297_v32 = vrot.slane %v3471_v39, 4 }
 0xc9e   :  { %v2292_v40 = vadd.f32 %v3469_v38, %v2291_v59 }
 0xc9f   :  { %v2298_v12 = vadd.f32 %v3471_v39, %v2297_v32 }
 0xca0   :  { %v2293_v35 = vrot.slane %v2292_v40, 2 }
 0xca1   :  { %v2299_v10 = vrot.slane %v2298_v12, 2 }
 0xca2   :  { %v2294_v46 = vadd.f32 %v2293_v35, %v2292_v40 }
 0xca3   :  { %v2300_v58 = vadd.f32 %v2299_v10, %v2298_v12 }
 0xca4   :  { %v2295_v0 = vrot.slane %v2294_v46, 1 }
 0xca5   :  { %v2301_v48 = vrot.slane %v2300_v58, 1 }
 0xca6   :  { %v2296_v41 = vadd.f32 %v2295_v0, %v2294_v46 }
 0xca7   :  { %v2302_v54 = vadd.f32 %v2301_v48, %v2300_v58 }
 0xca8   :  { %3472 = vrcp.f32 %v2296_v41 }
 0xca9   :  { %3474 = vrcp.f32 %v2302_v54 }
 0xcb2   :  { %v3473_v52 = vpop.eup %3472 }
 0xcb3   :  { %v3475_v30 = vpop.eup %3474  ;;  %v2304_v27 = vmul.f32 %v3473_v52, %v3469_v38 }
 0xcb4   :  { %v2306_v6 = vmul.f32 %v3475_v30, %v3471_v39 }
 0xcb5   :  { %2308 = vst [vmem:[#allocation18] sm:$0xff] %v2304_v27 }
 0xcb6   :  { %2309 = vst [vmem:[#allocation18 + $0x8] sm:$0xff] %v2306_v6 }
 0xcb7   :  { %3710 = shalt.err (!%p3707_p0)
}
 0xcb8   :  { %s3711_s3 = scalar_lea.hbm %s4719_s20, 256 }
 0xcb9   :  { %p3712_p1 = scmp.ne.s32.totalorder %s4719_s20, %s3711_s3  ;;  %p3715_p2 = scmp.lt.u32.totalorder %s3711_s3, %s4719_s20 }
 0xcbb   :  { %p3717_p3 = pnand %p3715_p2, %p3712_p1 }
 0xcbd   :  { %3720 = shalt.err (!%p3717_p3)
}
 0xcbe   :  { %2329 = dma.vmem_to_hbm [thread:$0]  %s2327_s0, 256, %s4719_s20, [#allocation19]  }
 0xcbf   :  { %3731 = dma.done.wait [#allocation4], 128  }
 0xcc0   :  { %3732 = vsyncadd [#allocation4], 4294967168 }
 0xcc1   :  { %3733 = dma.done.wait [#allocation19], 256  }
 0xcc2   :  { %3734 = vsyncadd [#allocation19], 4294967040 }
 0xcc3   :  { %2336 = vsyncpa [#allocation3], 1 }
 0xcc4   :  { %2337 = vsyncpa [#allocation6], 1 }
 0xcc5   :  { %2338 = vsyncpa [#allocation9], 1 }
 0xcc6   :  { %2339 = vsyncpa [#allocation12], 1 }
 0xcc7   :  { %2340 = vsyncpa [#allocation15], 1 }
 0xcc8   :  { %2341 = vsyncpa [#allocation4], 1 }
 0xcc9   :  { %2342 = vsyncpa [#allocation19], 1 }

</bundles_post_ra>
